<compile_context>
chip_gen: v6e
topology: v6e:2x2x1
jax: 0.10.0
libtpu: 0.0.40
codegen_flags: <defaults>
</compile_context>

<pallas_src>
import functools
import math

import jax
import jax.numpy as jnp
from jax import lax
from jax.experimental import pallas as pl
from jax.experimental.pallas import tpu as pltpu

BN_EPS = 1e-5
EXPANSION = 4


# --------------------------- Pallas kernels ---------------------------------

def _gemm_bn_kernel(a_ref, w_ref, b_ref, o_ref, *, relu):
    # A: (TM, K) bf16, W: (K, TN) bf16 (BN scale pre-folded), b: (1, TN) f32.
    acc = jnp.dot(a_ref[...], w_ref[...], preferred_element_type=jnp.float32)
    acc = acc + b_ref[...]
    if relu:
        acc = jnp.maximum(acc, 0.0)
    o_ref[...] = acc.astype(o_ref.dtype)


def _gemm_bn_res_kernel(a_ref, w_ref, b_ref, r_ref, o_ref, *, relu):
    # Same as above + fused residual add (r: (TM, TN) bf16 identity).
    acc = jnp.dot(a_ref[...], w_ref[...], preferred_element_type=jnp.float32)
    acc = acc + b_ref[...] + r_ref[...].astype(jnp.float32)
    if relu:
        acc = jnp.maximum(acc, 0.0)
    o_ref[...] = acc.astype(o_ref.dtype)


def _gemm_bn_ds_kernel(a_ref, w_ref, b_ref, x_ref, wd_ref, bd_ref, o_ref, *, relu):
    # conv3+bn3 fused with the downsample conv1x1+bn identity (two dots, one kernel).
    acc = jnp.dot(a_ref[...], w_ref[...], preferred_element_type=jnp.float32)
    acc = acc + jnp.dot(x_ref[...], wd_ref[...], preferred_element_type=jnp.float32)
    acc = acc + b_ref[...] + bd_ref[...]
    if relu:
        acc = jnp.maximum(acc, 0.0)
    o_ref[...] = acc.astype(o_ref.dtype)


def _conv3x3_kernel(x_ref, w_ref, b_ref, o_ref, *, oh, ow, stride, relu, nb, c):
    # x: (nb, s*s, Lh, Lw, C) bf16 phase-decomposed padded images.
    # w: (9*C, OC) bf16 (BN scale folded), b: (1, OC) f32, o: (nb, oh*ow, OC) bf16.
    # The nine shifted windows are packed into one in-VMEM (nb*oh*ow, 9*C) slab and
    # contracted in a single fat-K MXU dot (no HBM im2col, 1 dot instead of 9).
    s = stride
    rows = oh * ow
    slabs = []
    for b in range(nb):
        cols = []
        for di in range(3):
            for dj in range(3):
                xv = x_ref[b, (di % s) * s + (dj % s)]          # (Lh, Lw, C)
                qi, qj = di // s, dj // s
                cols.append(xv[qi:qi + oh, qj:qj + ow, :].reshape(rows, c))
            # column order k = di*3 + dj matches the (9*C, OC) weight row order
        slabs.append(jnp.concatenate(cols, axis=-1))            # (rows, 9*C)
    slab = slabs[0] if nb == 1 else jnp.concatenate(slabs, axis=0)
    acc = jnp.dot(slab, w_ref[...], preferred_element_type=jnp.float32)
    acc = acc + b_ref[...]
    if relu:
        acc = jnp.maximum(acc, 0.0)
    for b in range(nb):
        o_ref[b] = acc[b * rows:(b + 1) * rows].astype(o_ref.dtype)


# --------------------------- helpers -----------------------------------------

def _round_up(x, m):
    return ((x + m - 1) // m) * m


def _vmem_limit_bytes():
    # Generation-aware: use most of VMEM on 128 MiB parts (v5e/v6e), stay
    # conservative on 64 MiB parts (v7x).
    try:
        cap = int(pltpu.get_tpu_info().vmem_capacity_bytes)
    except Exception:
        cap = 64 * 1024 * 1024
    if cap >= 100 * 1024 * 1024:
        return int(cap * 0.72)
    return max(16 * 1024 * 1024, int(cap * 0.6))


def _compiler_params(n_axes=1):
    return pltpu.CompilerParams(
        dimension_semantics=("parallel",) * n_axes,
        vmem_limit_bytes=_vmem_limit_bytes())


def _fold_bn(bn_p):
    scale = bn_p["gamma"] / jnp.sqrt(bn_p["var"] + BN_EPS)
    bias = bn_p["beta"] - bn_p["mean"] * scale
    return scale, bias


def _prep_conv1x1(conv_p, bn_p):
    w = (conv_p["weight"] * conv_p["mtl_weight"])[:, :, 0, 0]    # (OC, IC)
    scale, bias = _fold_bn(bn_p)
    w_mat = (w.T * scale[None, :]).astype(jnp.bfloat16)          # (IC, OC), BN folded
    return w_mat, bias.reshape(1, -1).astype(jnp.float32)


def _prep_conv3x3(conv_p, bn_p):
    w = conv_p["weight"] * conv_p["mtl_weight"]                  # (OC, IC, 3, 3)
    scale, bias = _fold_bn(bn_p)
    oc, ic = w.shape[0], w.shape[1]
    w9 = jnp.transpose(w, (2, 3, 1, 0)).reshape(9 * ic, oc)      # row = (di*3+dj)*IC + c
    w9 = (w9 * scale[None, :]).astype(jnp.bfloat16)
    return w9, bias.reshape(1, oc).astype(jnp.float32)


def _build_phases(xp, stride, oh, ow):
    # xp: (N, Hp, Wp, C) zero-padded bf16 input -> (N, s*s, Lh, Lw, C) phase stack so
    # every 3x3 offset window is an UNSTRIDED slice of one phase.  Total data ~1x.
    s = stride
    assert s in (1, 2), "phase decomposition implemented for stride in {1, 2}"
    extra = 2 // s
    lh, lw = oh + extra, ow + extra
    phases = []
    for pi in range(s):
        for pj in range(s):
            ph = xp[:, pi::s, pj::s, :][:, :lh, :lw, :]
            pad_h, pad_w = lh - ph.shape[1], lw - ph.shape[2]
            if pad_h or pad_w:
                ph = jnp.pad(ph, ((0, 0), (0, pad_h), (0, pad_w), (0, 0)))
            phases.append(ph)
    return jnp.stack(phases, axis=1)


def _pick_tm(M):
    # Row tile: big, but >= 2 grid steps, and preferably a divisor of M (no pad/slice).
    if M <= 16:
        return _round_up(M, 8)
    cand = min(512, _round_up((M + 1) // 2, 8))
    if M % cand == 0:
        return cand
    for t in range(cand, 8, -8):
        if M % t == 0:
            return t
    return cand


def _pick_batch_tile(N, oh, ow):
    # Images per conv3x3 grid step: grow M per dot but keep >= 2 grid steps.
    if N <= 1:
        return 1
    cap = max(1, 512 // max(1, oh * ow))
    cap = min(cap, max(1, N // 2))
    nb = 1
    for d in range(1, cap + 1):
        if N % d == 0:
            nb = d
    return nb


# --------------------------- kernel wrappers ---------------------------------

def pallas_gemm_bn(a, w_mat, bias, *, residual=None, ds=None, relu=True,
                   out_dtype=jnp.bfloat16):
    # a: (M, K) bf16, w_mat: (K, OC) bf16, bias: (1, OC) f32.
    # residual: optional (M, OC) bf16 identity.
    # ds: optional (x_ds (M, Kd) bf16, w_ds (Kd, OC) bf16, b_ds (1, OC) f32) fused
    #     downsample identity path.
    M, K = a.shape
    OC = w_mat.shape[1]
    tm = _pick_tm(M)
    Mp = _round_up(M, tm)
    if Mp != M:
        pad = ((0, Mp - M), (0, 0))
        a = jnp.pad(a, pad)
        if residual is not None:
            residual = jnp.pad(residual, pad)
        if ds is not None:
            ds = (jnp.pad(ds[0], pad), ds[1], ds[2])
    tn = 512 if (OC > 512 and OC % 512 == 0) else OC
    grid = (Mp // tm, OC // tn)

    in_specs = [
        pl.BlockSpec((tm, K), lambda i, j: (i, 0)),
        pl.BlockSpec((K, tn), lambda i, j: (0, j)),
        pl.BlockSpec((1, tn), lambda i, j: (0, j)),
    ]
    args = [a, w_mat, bias]
    if ds is not None:
        x_ds, w_ds, b_ds = ds
        kd = x_ds.shape[1]
        in_specs += [
            pl.BlockSpec((tm, kd), lambda i, j: (i, 0)),
            pl.BlockSpec((kd, tn), lambda i, j: (0, j)),
            pl.BlockSpec((1, tn), lambda i, j: (0, j)),
        ]
        args += [x_ds, w_ds, b_ds]
        kernel = functools.partial(_gemm_bn_ds_kernel, relu=relu)
    elif residual is not None:
        in_specs.append(pl.BlockSpec((tm, tn), lambda i, j: (i, j)))
        args.append(residual)
        kernel = functools.partial(_gemm_bn_res_kernel, relu=relu)
    else:
        kernel = functools.partial(_gemm_bn_kernel, relu=relu)

    out = pl.pallas_call(
        kernel,
        out_shape=jax.ShapeDtypeStruct((Mp, OC), out_dtype),
        grid_spec=pltpu.PrefetchScalarGridSpec(
            num_scalar_prefetch=0,
            grid=grid,
            in_specs=in_specs,
            out_specs=pl.BlockSpec((tm, tn), lambda i, j: (i, j)),
        ),
        compiler_params=_compiler_params(2),
    )(*args)
    return out if Mp == M else out[:M]


def pallas_conv3x3_bn_relu(x, w9, bias, stride, relu=True):
    # x: (N, H, W, C) bf16 NHWC.  Returns (N, OH, OW, OC) bf16.  No im2col in HBM.
    N, H, W, C = x.shape
    s = stride
    oh = (H + 2 - 3) // s + 1
    ow = (W + 2 - 3) // s + 1
    OC = w9.shape[1]
    xp = jnp.pad(x, ((0, 0), (1, 1), (1, 1), (0, 0)))             # already bf16
    xph = _build_phases(xp, s, oh, ow)                            # (N, s*s, Lh, Lw, C)
    lh, lw = xph.shape[2], xph.shape[3]
    nb = _pick_batch_tile(N, oh, ow)
    assert N % nb == 0

    out = pl.pallas_call(
        functools.partial(_conv3x3_kernel, oh=oh, ow=ow, stride=s, relu=relu,
                          nb=nb, c=C),
        out_shape=jax.ShapeDtypeStruct((N, oh * ow, OC), jnp.bfloat16),
        grid_spec=pltpu.PrefetchScalarGridSpec(
            num_scalar_prefetch=0,
            grid=(N // nb,),
            in_specs=[
                pl.BlockSpec((nb, s * s, lh, lw, C), lambda n: (n, 0, 0, 0, 0)),
                pl.BlockSpec((9 * C, OC), lambda n: (0, 0)),
                pl.BlockSpec((1, OC), lambda n: (0, 0)),
            ],
            out_specs=pl.BlockSpec((nb, oh * ow, OC), lambda n: (n, 0, 0)),
        ),
        compiler_params=_compiler_params(1),
    )(xph, w9, bias)
    return out.reshape(N, oh, ow, OC)


# --------------------------- BottleneckMtl forward ----------------------------

def bottleneck_forward_nhwc(p, cfg, x):
    # x: (N, H, W, Cin) NHWC (any float dtype).  Matches BottleneckMtl.forward
    # (eval-mode BN).  Output is bf16 NHWC.
    N, H, W, Cin = x.shape
    stride, last = cfg["stride"], cfg["last"]
    assert stride in (1, 2)
    x_bf = x.astype(jnp.bfloat16)                                 # single cast for all users

    # conv1 (1x1) -> bn1 -> relu
    w1, b1 = _prep_conv1x1(p["conv1"], p["bn1"])
    width = w1.shape[1]
    out = pallas_gemm_bn(x_bf.reshape(N * H * W, Cin), w1, b1, relu=True)
    out = out.reshape(N, H, W, width)

    # conv2 (3x3, stride) -> bn2 -> relu   (fat-K in-VMEM slab, single dot)
    w9, b2 = _prep_conv3x3(p["conv2"], p["bn2"])
    out = pallas_conv3x3_bn_relu(out, w9, b2, stride, relu=True)
    _, OH, OW, _ = out.shape
    M = N * OH * OW

    # conv3 (1x1) -> bn3 -> (+identity) -> relu (if not last), all fused
    w3, b3 = _prep_conv1x1(p["conv3"], p["bn3"])
    out_c = w3.shape[1]
    out2d = out.reshape(M, width)
    if cfg["downsample"]:
        # downsample conv1x1+BN fused into the same kernel (no HBM identity tensor)
        w_ds, b_ds = _prep_conv1x1(p["ds_conv"], p["ds_bn"])
        x_ds = x_bf[:, ::stride, ::stride, :] if stride > 1 else x_bf
        out2d = pallas_gemm_bn(out2d, w3, b3,
                               ds=(x_ds.reshape(M, Cin), w_ds, b_ds),
                               relu=not last)
    else:
        assert Cin == out_c, "identity path requires Cin == planes * expansion"
        out2d = pallas_gemm_bn(out2d, w3, b3,
                               residual=x_bf.reshape(M, Cin), relu=not last)
    return out2d.reshape(N, OH, OW, out_c)


# --------------------------- parameter init ----------------------------------

def _conv_mtl_params(key, oc, ic, k):
    fan_out = oc * k * k
    std = math.sqrt(2.0 / fan_out)
    return dict(weight=std * jax.random.normal(key, (oc, ic, k, k), jnp.float32),
                mtl_weight=jnp.ones((oc, ic, 1, 1), jnp.float32))


def _bn_params(key, c):
    k1, k2, k3, k4 = jax.random.split(key, 4)
    return dict(
        gamma=1.0 + 0.1 * jax.random.normal(k1, (c,), jnp.float32),
        beta=0.1 * jax.random.normal(k2, (c,), jnp.float32),
        mean=0.1 * jax.random.normal(k3, (c,), jnp.float32),
        var=jnp.abs(1.0 + 0.1 * jax.random.normal(k4, (c,), jnp.float32)) + 0.1,
    )


def init_bottleneck_params(key, inplanes, planes, downsample, base_width=64, groups=1):
    width = int(planes * (base_width / 64.0)) * groups
    out_c = planes * EXPANSION
    keys = jax.random.split(key, 8)
    p = dict(
        conv1=_conv_mtl_params(keys[0], width, inplanes, 1),
        bn1=_bn_params(keys[1], width),
        conv2=_conv_mtl_params(keys[2], width, width, 3),
        bn2=_bn_params(keys[3], width),
        conv3=_conv_mtl_params(keys[4], out_c, width, 1),
        bn3=_bn_params(keys[5], out_c),
    )
    if downsample:
        p["ds_conv"] = _conv_mtl_params(keys[6], out_c, inplanes, 1)
        p["ds_bn"] = _bn_params(keys[7], out_c)
    return p


# --------------------------- pure-JAX reference -------------------------------

def _ref_conv_bn(x, conv_p, bn_p, stride, pad, relu, residual=None):
    w = conv_p["weight"] * conv_p["mtl_weight"]
    out = lax.conv_general_dilated(
        x, jnp.transpose(w, (2, 3, 1, 0)),
        window_strides=(stride, stride), padding=((pad, pad), (pad, pad)),
        dimension_numbers=("NHWC", "HWIO", "NHWC"),
        precision=lax.Precision.HIGHEST)
    scale, bias = _fold_bn(bn_p)
    out = out * scale + bias
    if residual is not None:
        out = out + residual
    if relu:
        out = jnp.maximum(out, 0.0)
    return out


def _ref_bottleneck(p, cfg, x):
    stride, last = cfg["stride"], cfg["last"]
    identity = (_ref_conv_bn(x, p["ds_conv"], p["ds_bn"], stride, 0, relu=False)
                if cfg["downsample"] else x)
    out = _ref_conv_bn(x, p["conv1"], p["bn1"], 1, 0, relu=True)
    out = _ref_conv_bn(out, p["conv2"], p["bn2"], stride, 1, relu=True)
    out = _ref_conv_bn(out, p["conv3"], p["bn3"], 1, 0, relu=False, residual=identity)
    if not last:
        out = jnp.maximum(out, 0.0)
    return out


# --------------------------- main ---------------------------------------------

if __name__ == "__main__":
    key = jax.random.PRNGKey(0)
    k1, k2, kx = jax.random.split(key, 3)

    inplanes, planes = 32, 16                      # width=16, out=64
    block1_cfg = dict(stride=2, downsample=True, last=False)
    block2_cfg = dict(stride=1, downsample=False, last=True)
    block1_p = init_bottleneck_params(k1, inplanes, planes, downsample=True)
    block2_p = init_bottleneck_params(k2, planes * EXPANSION, planes, downsample=False)

    x = jax.random.normal(kx, (2, inplanes, 16, 16), dtype=jnp.float32)   # NCHW

    @jax.jit
    def fwd(p1, p2, x_nchw):
        h = jnp.transpose(x_nchw, (0, 2, 3, 1))                           # -> NHWC
        h = bottleneck_forward_nhwc(p1, block1_cfg, h)
        h = bottleneck_forward_nhwc(p2, block2_cfg, h)
        return jnp.transpose(h, (0, 3, 1, 2)).astype(jnp.float32)         # -> NCHW

    out = jax.block_until_ready(fwd(block1_p, block2_p, x))
    assert out.shape == (2, planes * EXPANSION, 8, 8), out.shape
    assert bool(jnp.all(jnp.isfinite(out)))

    # Validate against a pure-JAX (fp32) reference; bf16 MXU / bf16-activation tolerance.
    x_nhwc = jnp.transpose(x, (0, 2, 3, 1))
    ref = _ref_bottleneck(block2_p, block2_cfg,
                          _ref_bottleneck(block1_p, block1_cfg, x_nhwc))
    ref = jnp.transpose(ref, (0, 3, 1, 2))
    rel_err = jnp.linalg.norm(out - ref) / jnp.maximum(jnp.linalg.norm(ref), 1e-6)
    assert float(rel_err) < 0.08, float(rel_err)

    print("KERNEL_OK")
</pallas_src>

<mosaic_0001>
module attributes {stable_mosaic.version = 11 : i64} {
  func.func @_gemm_bn_kernel(%arg0: i32, %arg1: i32, %arg2: memref<256x32xbf16, #tpu.memory_space<vmem>>, %arg3: memref<32x16xbf16, #tpu.memory_space<vmem>>, %arg4: memref<1x16xf32, #tpu.memory_space<vmem>>, %arg5: memref<256x16xbf16, #tpu.memory_space<vmem>>) attributes {dimension_semantics = [#tpu.dimension_semantics<parallel>, #tpu.dimension_semantics<parallel>], iteration_bounds = array<i64: 2, 1>, scalar_prefetch = 0 : i64, scratch_operands = 0 : i64, tpu.core_type = #tpu.core_type<tc>, window_params = [{transform_indices = @transform_0, window_bounds = array<i64: 256, 32>}, {transform_indices = @transform_1, window_bounds = array<i64: 32, 16>}, {transform_indices = @transform_2, window_bounds = array<i64: 1, 16>}, {transform_indices = @transform_3, window_bounds = array<i64: 256, 16>}]} {
    %c0 = arith.constant 0 : index
    %c0_0 = arith.constant 0 : index
    %0 = vector.load %arg2[%c0, %c0_0] : memref<256x32xbf16, #tpu.memory_space<vmem>>, vector<256x32xbf16>
    %c0_1 = arith.constant 0 : index
    %c0_2 = arith.constant 0 : index
    %1 = vector.load %arg3[%c0_1, %c0_2] : memref<32x16xbf16, #tpu.memory_space<vmem>>, vector<32x16xbf16>
    %cst = arith.constant dense<0.000000e+00> : vector<256x16xf32>
    %2 = tpu.matmul %0, %1, %cst {dimension_numbers = #tpu.dot_dimension_numbers<[1], [0], [0], [1], [0, 0, 1, 1], [], []>} : vector<256x32xbf16>, vector<32x16xbf16>, vector<256x16xf32> -> vector<256x16xf32>
    %c0_3 = arith.constant 0 : index
    %c0_4 = arith.constant 0 : index
    %3 = vector.load %arg4[%c0_3, %c0_4] : memref<1x16xf32, #tpu.memory_space<vmem>>, vector<1x16xf32>
    %4 = vector.broadcast %3 : vector<1x16xf32> to vector<256x16xf32>
    %5 = arith.addf %2, %4 : vector<256x16xf32>
    %cst_5 = arith.constant 0.000000e+00 : f32
    %6 = vector.broadcast %cst_5 : f32 to vector<256x16xf32>
    %7 = arith.maximumf %5, %6 : vector<256x16xf32>
    %8 = arith.truncf %7 : vector<256x16xf32> to vector<256x16xbf16>
    %c0_6 = arith.constant 0 : index
    %c0_7 = arith.constant 0 : index
    %9 = vector.load %arg5[%c0_6, %c0_7] : memref<256x16xbf16, #tpu.memory_space<vmem>>, vector<256x16xbf16>
    tpu.vector_store %arg5[%c0_6, %c0_7], %8 {strides = array<i32>} : memref<256x16xbf16, #tpu.memory_space<vmem>>, vector<256x16xbf16>,
    return
  }
  func.func @transform_0(%arg0: i32, %arg1: i32) -> (i32, i32) {
    %c0_i32 = arith.constant 0 : i32
    %c0_i32_0 = arith.constant 0 : i32
    return %arg0, %c0_i32 : i32, i32
  }
  func.func @transform_1(%arg0: i32, %arg1: i32) -> (i32, i32) {
    %c0_i32 = arith.constant 0 : i32
    %c0_i32_0 = arith.constant 0 : i32
    return %c0_i32, %arg1 : i32, i32
  }
  func.func @transform_2(%arg0: i32, %arg1: i32) -> (i32, i32) {
    %c0_i32 = arith.constant 0 : i32
    %c0_i32_0 = arith.constant 0 : i32
    return %c0_i32, %arg1 : i32, i32
  }
  func.func @transform_3(%arg0: i32, %arg1: i32) -> (i32, i32) {
    %c0_i32 = arith.constant 0 : i32
    return %arg0, %arg1 : i32, i32
  }
}

module attributes {stable_mosaic.version = 11 : i64} {
  func.func @_conv3x3_kernel(%arg0: i32, %arg1: memref<1x4x9x9x16xbf16, #tpu.memory_space<vmem>>, %arg2: memref<144x16xbf16, #tpu.memory_space<vmem>>, %arg3: memref<1x16xf32, #tpu.memory_space<vmem>>, %arg4: memref<1x64x16xbf16, #tpu.memory_space<vmem>>) attributes {dimension_semantics = [#tpu.dimension_semantics<parallel>], iteration_bounds = array<i64: 2>, scalar_prefetch = 0 : i64, scratch_operands = 0 : i64, tpu.core_type = #tpu.core_type<tc>, window_params = [{transform_indices = @transform_0, window_bounds = array<i64: 1, 4, 9, 9, 16>}, {pipeline_mode = #tpu.pipeline_mode<synchronous>, transform_indices = @transform_1, window_bounds = array<i64: 144, 16>}, {pipeline_mode = #tpu.pipeline_mode<synchronous>, transform_indices = @transform_2, window_bounds = array<i64: 1, 16>}, {transform_indices = @transform_3, window_bounds = array<i64: 1, 64, 16>}]} {
    %c0 = arith.constant 0 : index
    %c0_0 = arith.constant 0 : index
    %c0_1 = arith.constant 0 : index
    %c0_2 = arith.constant 0 : index
    %c0_3 = arith.constant 0 : index
    %0 = vector.load %arg1[%c0, %c0_0, %c0_1, %c0_2, %c0_3] : memref<1x4x9x9x16xbf16, #tpu.memory_space<vmem>>, vector<1x1x9x9x16xbf16>
    %1 = vector.shape_cast %0 : vector<1x1x9x9x16xbf16> to vector<9x9x16xbf16>
    %2 = vector.extract_strided_slice %1 {offsets = [0, 0, 0], sizes = [8, 8, 16], strides = [1, 1, 1]} : vector<9x9x16xbf16> to vector<8x8x16xbf16>
    %3 = vector.shape_cast %2 : vector<8x8x16xbf16> to vector<64x16xbf16>
    %c0_4 = arith.constant 0 : index
    %c1 = arith.constant 1 : index
    %c0_5 = arith.constant 0 : index
    %c0_6 = arith.constant 0 : index
    %c0_7 = arith.constant 0 : index
    %4 = vector.load %arg1[%c0_4, %c1, %c0_5, %c0_6, %c0_7] : memref<1x4x9x9x16xbf16, #tpu.memory_space<vmem>>, vector<1x1x9x9x16xbf16>
    %5 = vector.shape_cast %4 : vector<1x1x9x9x16xbf16> to vector<9x9x16xbf16>
    %6 = vector.extract_strided_slice %5 {offsets = [0, 0, 0], sizes = [8, 8, 16], strides = [1, 1, 1]} : vector<9x9x16xbf16> to vector<8x8x16xbf16>
    %7 = vector.shape_cast %6 : vector<8x8x16xbf16> to vector<64x16xbf16>
    %c0_8 = arith.constant 0 : index
    %c0_9 = arith.constant 0 : index
    %c0_10 = arith.constant 0 : index
    %c0_11 = arith.constant 0 : index
    %c0_12 = arith.constant 0 : index
    %8 = vector.load %arg1[%c0_8, %c0_9, %c0_10, %c0_11, %c0_12] : memref<1x4x9x9x16xbf16, #tpu.memory_space<vmem>>, vector<1x1x9x9x16xbf16>
    %9 = vector.shape_cast %8 : vector<1x1x9x9x16xbf16> to vector<9x9x16xbf16>
    %10 = vector.extract_strided_slice %9 {offsets = [0, 1, 0], sizes = [8, 8, 16], strides = [1, 1, 1]} : vector<9x9x16xbf16> to vector<8x8x16xbf16>
    %11 = vector.shape_cast %10 : vector<8x8x16xbf16> to vector<64x16xbf16>
    %c0_13 = arith.constant 0 : index
    %c2 = arith.constant 2 : index
    %c0_14 = arith.constant 0 : index
    %c0_15 = arith.constant 0 : index
    %c0_16 = arith.constant 0 : index
    %12 = vector.load %arg1[%c0_13, %c2, %c0_14, %c0_15, %c0_16] : memref<1x4x9x9x16xbf16, #tpu.memory_space<vmem>>, vector<1x1x9x9x16xbf16>
    %13 = vector.shape_cast %12 : vector<1x1x9x9x16xbf16> to vector<9x9x16xbf16>
    %14 = vector.extract_strided_slice %13 {offsets = [0, 0, 0], sizes = [8, 8, 16], strides = [1, 1, 1]} : vector<9x9x16xbf16> to vector<8x8x16xbf16>
    %15 = vector.shape_cast %14 : vector<8x8x16xbf16> to vector<64x16xbf16>
    %c0_17 = arith.constant 0 : index
    %c3 = arith.constant 3 : index
    %c0_18 = arith.constant 0 : index
    %c0_19 = arith.constant 0 : index
    %c0_20 = arith.constant 0 : index
    %16 = vector.load %arg1[%c0_17, %c3, %c0_18, %c0_19, %c0_20] : memref<1x4x9x9x16xbf16, #tpu.memory_space<vmem>>, vector<1x1x9x9x16xbf16>
    %17 = vector.shape_cast %16 : vector<1x1x9x9x16xbf16> to vector<9x9x16xbf16>
    %18 = vector.extract_strided_slice %17 {offsets = [0, 0, 0], sizes = [8, 8, 16], strides = [1, 1, 1]} : vector<9x9x16xbf16> to vector<8x8x16xbf16>
    %19 = vector.shape_cast %18 : vector<8x8x16xbf16> to vector<64x16xbf16>
    %c0_21 = arith.constant 0 : index
    %c2_22 = arith.constant 2 : index
    %c0_23 = arith.constant 0 : index
    %c0_24 = arith.constant 0 : index
    %c0_25 = arith.constant 0 : index
    %20 = vector.load %arg1[%c0_21, %c2_22, %c0_23, %c0_24, %c0_25] : memref<1x4x9x9x16xbf16, #tpu.memory_space<vmem>>, vector<1x1x9x9x16xbf16>
    %21 = vector.shape_cast %20 : vector<1x1x9x9x16xbf16> to vector<9x9x16xbf16>
    %22 = vector.extract_strided_slice %21 {offsets = [0, 1, 0], sizes = [8, 8, 16], strides = [1, 1, 1]} : vector<9x9x16xbf16> to vector<8x8x16xbf16>
    %23 = vector.shape_cast %22 : vector<8x8x16xbf16> to vector<64x16xbf16>
    %c0_26 = arith.constant 0 : index
    %c0_27 = arith.constant 0 : index
    %c0_28 = arith.constant 0 : index
    %c0_29 = arith.constant 0 : index
    %c0_30 = arith.constant 0 : index
    %24 = vector.load %arg1[%c0_26, %c0_27, %c0_28, %c0_29, %c0_30] : memref<1x4x9x9x16xbf16, #tpu.memory_space<vmem>>, vector<1x1x9x9x16xbf16>
    %25 = vector.shape_cast %24 : vector<1x1x9x9x16xbf16> to vector<9x9x16xbf16>
    %26 = vector.extract_strided_slice %25 {offsets = [1, 0, 0], sizes = [8, 8, 16], strides = [1, 1, 1]} : vector<9x9x16xbf16> to vector<8x8x16xbf16>
    %27 = vector.shape_cast %26 : vector<8x8x16xbf16> to vector<64x16xbf16>
    %c0_31 = arith.constant 0 : index
    %c1_32 = arith.constant 1 : index
    %c0_33 = arith.constant 0 : index
    %c0_34 = arith.constant 0 : index
    %c0_35 = arith.constant 0 : index
    %28 = vector.load %arg1[%c0_31, %c1_32, %c0_33, %c0_34, %c0_35] : memref<1x4x9x9x16xbf16, #tpu.memory_space<vmem>>, vector<1x1x9x9x16xbf16>
    %29 = vector.shape_cast %28 : vector<1x1x9x9x16xbf16> to vector<9x9x16xbf16>
    %30 = vector.extract_strided_slice %29 {offsets = [1, 0, 0], sizes = [8, 8, 16], strides = [1, 1, 1]} : vector<9x9x16xbf16> to vector<8x8x16xbf16>
    %31 = vector.shape_cast %30 : vector<8x8x16xbf16> to vector<64x16xbf16>
    %c0_36 = arith.constant 0 : index
    %c0_37 = arith.constant 0 : index
    %c0_38 = arith.constant 0 : index
    %c0_39 = arith.constant 0 : index
    %c0_40 = arith.constant 0 : index
    %32 = vector.load %arg1[%c0_36, %c0_37, %c0_38, %c0_39, %c0_40] : memref<1x4x9x9x16xbf16, #tpu.memory_space<vmem>>, vector<1x1x9x9x16xbf16>
    %33 = vector.shape_cast %32 : vector<1x1x9x9x16xbf16> to vector<9x9x16xbf16>
    %34 = vector.extract_strided_slice %33 {offsets = [1, 1, 0], sizes = [8, 8, 16], strides = [1, 1, 1]} : vector<9x9x16xbf16> to vector<8x8x16xbf16>
    %35 = vector.shape_cast %34 : vector<8x8x16xbf16> to vector<64x16xbf16>
    %36 = tpu.concatenate %3, %7, %11, %15, %19, %23, %27, %31, %35 in 1 : vector<64x16xbf16>, vector<64x16xbf16>, vector<64x16xbf16>, vector<64x16xbf16>, vector<64x16xbf16>, vector<64x16xbf16>, vector<64x16xbf16>, vector<64x16xbf16>, vector<64x16xbf16> -> vector<64x144xbf16>
    %c0_41 = arith.constant 0 : index
    %c0_42 = arith.constant 0 : index
    %37 = vector.load %arg2[%c0_41, %c0_42] : memref<144x16xbf16, #tpu.memory_space<vmem>>, vector<144x16xbf16>
    %cst = arith.constant dense<0.000000e+00> : vector<64x16xf32>
    %38 = tpu.matmul %36, %37, %cst {dimension_numbers = #tpu.dot_dimension_numbers<[1], [0], [0], [1], [0, 0, 1, 1], [], []>} : vector<64x144xbf16>, vector<144x16xbf16>, vector<64x16xf32> -> vector<64x16xf32>
    %c0_43 = arith.constant 0 : index
    %c0_44 = arith.constant 0 : index
    %39 = vector.load %arg3[%c0_43, %c0_44] : memref<1x16xf32, #tpu.memory_space<vmem>>, vector<1x16xf32>
    %40 = vector.broadcast %39 : vector<1x16xf32> to vector<64x16xf32>
    %41 = arith.addf %38, %40 : vector<64x16xf32>
    %cst_45 = arith.constant 0.000000e+00 : f32
    %42 = vector.broadcast %cst_45 : f32 to vector<64x16xf32>
    %43 = arith.maximumf %41, %42 : vector<64x16xf32>
    %44 = arith.truncf %43 : vector<64x16xf32> to vector<64x16xbf16>
    %c0_46 = arith.constant 0 : index
    %c0_47 = arith.constant 0 : index
    %c0_48 = arith.constant 0 : index
    %45 = vector.load %arg4[%c0_46, %c0_47, %c0_48] : memref<1x64x16xbf16, #tpu.memory_space<vmem>>, vector<1x64x16xbf16>
    %46 = vector.shape_cast %45 : vector<1x64x16xbf16> to vector<64x16xbf16>
    %47 = vector.shape_cast %44 : vector<64x16xbf16> to vector<1x64x16xbf16>
    tpu.vector_store %arg4[%c0_46, %c0_47, %c0_48], %47 {strides = array<i32>} : memref<1x64x16xbf16, #tpu.memory_space<vmem>>, vector<1x64x16xbf16>,
    return
  }
  func.func @transform_0(%arg0: i32) -> (i32, i32, i32, i32, i32) {
    %c0_i32 = arith.constant 0 : i32
    %c0_i32_0 = arith.constant 0 : i32
    %c0_i32_1 = arith.constant 0 : i32
    %c0_i32_2 = arith.constant 0 : i32
    %c0_i32_3 = arith.constant 0 : i32
    return %arg0, %c0_i32, %c0_i32_0, %c0_i32_1, %c0_i32_2 : i32, i32, i32, i32, i32
  }
  func.func @transform_1(%arg0: i32) -> (i32, i32) {
    %c0_i32 = arith.constant 0 : i32
    %c0_i32_0 = arith.constant 0 : i32
    %c0_i32_1 = arith.constant 0 : i32
    return %c0_i32, %c0_i32_0 : i32, i32
  }
  func.func @transform_2(%arg0: i32) -> (i32, i32) {
    %c0_i32 = arith.constant 0 : i32
    %c0_i32_0 = arith.constant 0 : i32
    %c0_i32_1 = arith.constant 0 : i32
    return %c0_i32, %c0_i32_0 : i32, i32
  }
  func.func @transform_3(%arg0: i32) -> (i32, i32, i32) {
    %c0_i32 = arith.constant 0 : i32
    %c0_i32_0 = arith.constant 0 : i32
    %c0_i32_1 = arith.constant 0 : i32
    return %arg0, %c0_i32, %c0_i32_0 : i32, i32, i32
  }
}

module attributes {stable_mosaic.version = 11 : i64} {
  func.func @_gemm_bn_ds_kernel(%arg0: i32, %arg1: i32, %arg2: memref<64x16xbf16, #tpu.memory_space<vmem>>, %arg3: memref<16x64xbf16, #tpu.memory_space<vmem>>, %arg4: memref<1x64xf32, #tpu.memory_space<vmem>>, %arg5: memref<64x32xbf16, #tpu.memory_space<vmem>>, %arg6: memref<32x64xbf16, #tpu.memory_space<vmem>>, %arg7: memref<1x64xf32, #tpu.memory_space<vmem>>, %arg8: memref<64x64xbf16, #tpu.memory_space<vmem>>) attributes {dimension_semantics = [#tpu.dimension_semantics<parallel>, #tpu.dimension_semantics<parallel>], iteration_bounds = array<i64: 2, 1>, scalar_prefetch = 0 : i64, scratch_operands = 0 : i64, tpu.core_type = #tpu.core_type<tc>, window_params = [{transform_indices = @transform_0, window_bounds = array<i64: 64, 16>}, {transform_indices = @transform_1, window_bounds = array<i64: 16, 64>}, {transform_indices = @transform_2, window_bounds = array<i64: 1, 64>}, {transform_indices = @transform_3, window_bounds = array<i64: 64, 32>}, {transform_indices = @transform_4, window_bounds = array<i64: 32, 64>}, {transform_indices = @transform_5, window_bounds = array<i64: 1, 64>}, {transform_indices = @transform_6, window_bounds = array<i64: 64, 64>}]} {
    %c0 = arith.constant 0 : index
    %c0_0 = arith.constant 0 : index
    %0 = vector.load %arg2[%c0, %c0_0] : memref<64x16xbf16, #tpu.memory_space<vmem>>, vector<64x16xbf16>
    %c0_1 = arith.constant 0 : index
    %c0_2 = arith.constant 0 : index
    %1 = vector.load %arg3[%c0_1, %c0_2] : memref<16x64xbf16, #tpu.memory_space<vmem>>, vector<16x64xbf16>
    %cst = arith.constant dense<0.000000e+00> : vector<64x64xf32>
    %2 = tpu.matmul %0, %1, %cst {dimension_numbers = #tpu.dot_dimension_numbers<[1], [0], [0], [1], [0, 0, 1, 1], [], []>} : vector<64x16xbf16>, vector<16x64xbf16>, vector<64x64xf32> -> vector<64x64xf32>
    %c0_3 = arith.constant 0 : index
    %c0_4 = arith.constant 0 : index
    %3 = vector.load %arg5[%c0_3, %c0_4] : memref<64x32xbf16, #tpu.memory_space<vmem>>, vector<64x32xbf16>
    %c0_5 = arith.constant 0 : index
    %c0_6 = arith.constant 0 : index
    %4 = vector.load %arg6[%c0_5, %c0_6] : memref<32x64xbf16, #tpu.memory_space<vmem>>, vector<32x64xbf16>
    %cst_7 = arith.constant dense<0.000000e+00> : vector<64x64xf32>
    %5 = tpu.matmul %3, %4, %cst_7 {dimension_numbers = #tpu.dot_dimension_numbers<[1], [0], [0], [1], [0, 0, 1, 1], [], []>} : vector<64x32xbf16>, vector<32x64xbf16>, vector<64x64xf32> -> vector<64x64xf32>
    %6 = arith.addf %2, %5 : vector<64x64xf32>
    %c0_8 = arith.constant 0 : index
    %c0_9 = arith.constant 0 : index
    %7 = vector.load %arg4[%c0_8, %c0_9] : memref<1x64xf32, #tpu.memory_space<vmem>>, vector<1x64xf32>
    %8 = vector.broadcast %7 : vector<1x64xf32> to vector<64x64xf32>
    %9 = arith.addf %6, %8 : vector<64x64xf32>
    %c0_10 = arith.constant 0 : index
    %c0_11 = arith.constant 0 : index
    %10 = vector.load %arg7[%c0_10, %c0_11] : memref<1x64xf32, #tpu.memory_space<vmem>>, vector<1x64xf32>
    %11 = vector.broadcast %10 : vector<1x64xf32> to vector<64x64xf32>
    %12 = arith.addf %9, %11 : vector<64x64xf32>
    %cst_12 = arith.constant 0.000000e+00 : f32
    %13 = vector.broadcast %cst_12 : f32 to vector<64x64xf32>
    %14 = arith.maximumf %12, %13 : vector<64x64xf32>
    %15 = arith.truncf %14 : vector<64x64xf32> to vector<64x64xbf16>
    %c0_13 = arith.constant 0 : index
    %c0_14 = arith.constant 0 : index
    %16 = vector.load %arg8[%c0_13, %c0_14] : memref<64x64xbf16, #tpu.memory_space<vmem>>, vector<64x64xbf16>
    tpu.vector_store %arg8[%c0_13, %c0_14], %15 {strides = array<i32>} : memref<64x64xbf16, #tpu.memory_space<vmem>>, vector<64x64xbf16>,
    return
  }
  func.func @transform_0(%arg0: i32, %arg1: i32) -> (i32, i32) {
    %c0_i32 = arith.constant 0 : i32
    %c0_i32_0 = arith.constant 0 : i32
    return %arg0, %c0_i32 : i32, i32
  }
  func.func @transform_1(%arg0: i32, %arg1: i32) -> (i32, i32) {
    %c0_i32 = arith.constant 0 : i32
    %c0_i32_0 = arith.constant 0 : i32
    return %c0_i32, %arg1 : i32, i32
  }
  func.func @transform_2(%arg0: i32, %arg1: i32) -> (i32, i32) {
    %c0_i32 = arith.constant 0 : i32
    %c0_i32_0 = arith.constant 0 : i32
    return %c0_i32, %arg1 : i32, i32
  }
  func.func @transform_3(%arg0: i32, %arg1: i32) -> (i32, i32) {
    %c0_i32 = arith.constant 0 : i32
    %c0_i32_0 = arith.constant 0 : i32
    return %arg0, %c0_i32 : i32, i32
  }
  func.func @transform_4(%arg0: i32, %arg1: i32) -> (i32, i32) {
    %c0_i32 = arith.constant 0 : i32
    %c0_i32_0 = arith.constant 0 : i32
    return %c0_i32, %arg1 : i32, i32
  }
  func.func @transform_5(%arg0: i32, %arg1: i32) -> (i32, i32) {
    %c0_i32 = arith.constant 0 : i32
    %c0_i32_0 = arith.constant 0 : i32
    return %c0_i32, %arg1 : i32, i32
  }
  func.func @transform_6(%arg0: i32, %arg1: i32) -> (i32, i32) {
    %c0_i32 = arith.constant 0 : i32
    return %arg0, %arg1 : i32, i32
  }
}

module attributes {stable_mosaic.version = 11 : i64} {
  func.func @_gemm_bn_kernel(%arg0: i32, %arg1: i32, %arg2: memref<64x64xbf16, #tpu.memory_space<vmem>>, %arg3: memref<64x16xbf16, #tpu.memory_space<vmem>>, %arg4: memref<1x16xf32, #tpu.memory_space<vmem>>, %arg5: memref<64x16xbf16, #tpu.memory_space<vmem>>) attributes {dimension_semantics = [#tpu.dimension_semantics<parallel>, #tpu.dimension_semantics<parallel>], iteration_bounds = array<i64: 2, 1>, scalar_prefetch = 0 : i64, scratch_operands = 0 : i64, tpu.core_type = #tpu.core_type<tc>, window_params = [{transform_indices = @transform_0, window_bounds = array<i64: 64, 64>}, {transform_indices = @transform_1, window_bounds = array<i64: 64, 16>}, {transform_indices = @transform_2, window_bounds = array<i64: 1, 16>}, {transform_indices = @transform_3, window_bounds = array<i64: 64, 16>}]} {
    %c0 = arith.constant 0 : index
    %c0_0 = arith.constant 0 : index
    %0 = vector.load %arg2[%c0, %c0_0] : memref<64x64xbf16, #tpu.memory_space<vmem>>, vector<64x64xbf16>
    %c0_1 = arith.constant 0 : index
    %c0_2 = arith.constant 0 : index
    %1 = vector.load %arg3[%c0_1, %c0_2] : memref<64x16xbf16, #tpu.memory_space<vmem>>, vector<64x16xbf16>
    %cst = arith.constant dense<0.000000e+00> : vector<64x16xf32>
    %2 = tpu.matmul %0, %1, %cst {dimension_numbers = #tpu.dot_dimension_numbers<[1], [0], [0], [1], [0, 0, 1, 1], [], []>} : vector<64x64xbf16>, vector<64x16xbf16>, vector<64x16xf32> -> vector<64x16xf32>
    %c0_3 = arith.constant 0 : index
    %c0_4 = arith.constant 0 : index
    %3 = vector.load %arg4[%c0_3, %c0_4] : memref<1x16xf32, #tpu.memory_space<vmem>>, vector<1x16xf32>
    %4 = vector.broadcast %3 : vector<1x16xf32> to vector<64x16xf32>
    %5 = arith.addf %2, %4 : vector<64x16xf32>
    %cst_5 = arith.constant 0.000000e+00 : f32
    %6 = vector.broadcast %cst_5 : f32 to vector<64x16xf32>
    %7 = arith.maximumf %5, %6 : vector<64x16xf32>
    %8 = arith.truncf %7 : vector<64x16xf32> to vector<64x16xbf16>
    %c0_6 = arith.constant 0 : index
    %c0_7 = arith.constant 0 : index
    %9 = vector.load %arg5[%c0_6, %c0_7] : memref<64x16xbf16, #tpu.memory_space<vmem>>, vector<64x16xbf16>
    tpu.vector_store %arg5[%c0_6, %c0_7], %8 {strides = array<i32>} : memref<64x16xbf16, #tpu.memory_space<vmem>>, vector<64x16xbf16>,
    return
  }
  func.func @transform_0(%arg0: i32, %arg1: i32) -> (i32, i32) {
    %c0_i32 = arith.constant 0 : i32
    %c0_i32_0 = arith.constant 0 : i32
    return %arg0, %c0_i32 : i32, i32
  }
  func.func @transform_1(%arg0: i32, %arg1: i32) -> (i32, i32) {
    %c0_i32 = arith.constant 0 : i32
    %c0_i32_0 = arith.constant 0 : i32
    return %c0_i32, %arg1 : i32, i32
  }
  func.func @transform_2(%arg0: i32, %arg1: i32) -> (i32, i32) {
    %c0_i32 = arith.constant 0 : i32
    %c0_i32_0 = arith.constant 0 : i32
    return %c0_i32, %arg1 : i32, i32
  }
  func.func @transform_3(%arg0: i32, %arg1: i32) -> (i32, i32) {
    %c0_i32 = arith.constant 0 : i32
    return %arg0, %arg1 : i32, i32
  }
}

module attributes {stable_mosaic.version = 11 : i64} {
  func.func @_conv3x3_kernel(%arg0: i32, %arg1: memref<1x1x10x10x16xbf16, #tpu.memory_space<vmem>>, %arg2: memref<144x16xbf16, #tpu.memory_space<vmem>>, %arg3: memref<1x16xf32, #tpu.memory_space<vmem>>, %arg4: memref<1x64x16xbf16, #tpu.memory_space<vmem>>) attributes {dimension_semantics = [#tpu.dimension_semantics<parallel>], iteration_bounds = array<i64: 2>, scalar_prefetch = 0 : i64, scratch_operands = 0 : i64, tpu.core_type = #tpu.core_type<tc>, window_params = [{transform_indices = @transform_0, window_bounds = array<i64: 1, 1, 10, 10, 16>}, {pipeline_mode = #tpu.pipeline_mode<synchronous>, transform_indices = @transform_1, window_bounds = array<i64: 144, 16>}, {pipeline_mode = #tpu.pipeline_mode<synchronous>, transform_indices = @transform_2, window_bounds = array<i64: 1, 16>}, {transform_indices = @transform_3, window_bounds = array<i64: 1, 64, 16>}]} {
    %c0 = arith.constant 0 : index
    %c0_0 = arith.constant 0 : index
    %c0_1 = arith.constant 0 : index
    %c0_2 = arith.constant 0 : index
    %c0_3 = arith.constant 0 : index
    %0 = vector.load %arg1[%c0, %c0_0, %c0_1, %c0_2, %c0_3] : memref<1x1x10x10x16xbf16, #tpu.memory_space<vmem>>, vector<1x1x10x10x16xbf16>
    %1 = vector.shape_cast %0 : vector<1x1x10x10x16xbf16> to vector<10x10x16xbf16>
    %2 = vector.extract_strided_slice %1 {offsets = [0, 0, 0], sizes = [8, 8, 16], strides = [1, 1, 1]} : vector<10x10x16xbf16> to vector<8x8x16xbf16>
    %3 = vector.shape_cast %2 : vector<8x8x16xbf16> to vector<64x16xbf16>
    %c0_4 = arith.constant 0 : index
    %c0_5 = arith.constant 0 : index
    %c0_6 = arith.constant 0 : index
    %c0_7 = arith.constant 0 : index
    %c0_8 = arith.constant 0 : index
    %4 = vector.load %arg1[%c0_4, %c0_5, %c0_6, %c0_7, %c0_8] : memref<1x1x10x10x16xbf16, #tpu.memory_space<vmem>>, vector<1x1x10x10x16xbf16>
    %5 = vector.shape_cast %4 : vector<1x1x10x10x16xbf16> to vector<10x10x16xbf16>
    %6 = vector.extract_strided_slice %5 {offsets = [0, 1, 0], sizes = [8, 8, 16], strides = [1, 1, 1]} : vector<10x10x16xbf16> to vector<8x8x16xbf16>
    %7 = vector.shape_cast %6 : vector<8x8x16xbf16> to vector<64x16xbf16>
    %c0_9 = arith.constant 0 : index
    %c0_10 = arith.constant 0 : index
    %c0_11 = arith.constant 0 : index
    %c0_12 = arith.constant 0 : index
    %c0_13 = arith.constant 0 : index
    %8 = vector.load %arg1[%c0_9, %c0_10, %c0_11, %c0_12, %c0_13] : memref<1x1x10x10x16xbf16, #tpu.memory_space<vmem>>, vector<1x1x10x10x16xbf16>
    %9 = vector.shape_cast %8 : vector<1x1x10x10x16xbf16> to vector<10x10x16xbf16>
    %10 = vector.extract_strided_slice %9 {offsets = [0, 2, 0], sizes = [8, 8, 16], strides = [1, 1, 1]} : vector<10x10x16xbf16> to vector<8x8x16xbf16>
    %11 = vector.shape_cast %10 : vector<8x8x16xbf16> to vector<64x16xbf16>
    %c0_14 = arith.constant 0 : index
    %c0_15 = arith.constant 0 : index
    %c0_16 = arith.constant 0 : index
    %c0_17 = arith.constant 0 : index
    %c0_18 = arith.constant 0 : index
    %12 = vector.load %arg1[%c0_14, %c0_15, %c0_16, %c0_17, %c0_18] : memref<1x1x10x10x16xbf16, #tpu.memory_space<vmem>>, vector<1x1x10x10x16xbf16>
    %13 = vector.shape_cast %12 : vector<1x1x10x10x16xbf16> to vector<10x10x16xbf16>
    %14 = vector.extract_strided_slice %13 {offsets = [1, 0, 0], sizes = [8, 8, 16], strides = [1, 1, 1]} : vector<10x10x16xbf16> to vector<8x8x16xbf16>
    %15 = vector.shape_cast %14 : vector<8x8x16xbf16> to vector<64x16xbf16>
    %c0_19 = arith.constant 0 : index
    %c0_20 = arith.constant 0 : index
    %c0_21 = arith.constant 0 : index
    %c0_22 = arith.constant 0 : index
    %c0_23 = arith.constant 0 : index
    %16 = vector.load %arg1[%c0_19, %c0_20, %c0_21, %c0_22, %c0_23] : memref<1x1x10x10x16xbf16, #tpu.memory_space<vmem>>, vector<1x1x10x10x16xbf16>
    %17 = vector.shape_cast %16 : vector<1x1x10x10x16xbf16> to vector<10x10x16xbf16>
    %18 = vector.extract_strided_slice %17 {offsets = [1, 1, 0], sizes = [8, 8, 16], strides = [1, 1, 1]} : vector<10x10x16xbf16> to vector<8x8x16xbf16>
    %19 = vector.shape_cast %18 : vector<8x8x16xbf16> to vector<64x16xbf16>
    %c0_24 = arith.constant 0 : index
    %c0_25 = arith.constant 0 : index
    %c0_26 = arith.constant 0 : index
    %c0_27 = arith.constant 0 : index
    %c0_28 = arith.constant 0 : index
    %20 = vector.load %arg1[%c0_24, %c0_25, %c0_26, %c0_27, %c0_28] : memref<1x1x10x10x16xbf16, #tpu.memory_space<vmem>>, vector<1x1x10x10x16xbf16>
    %21 = vector.shape_cast %20 : vector<1x1x10x10x16xbf16> to vector<10x10x16xbf16>
    %22 = vector.extract_strided_slice %21 {offsets = [1, 2, 0], sizes = [8, 8, 16], strides = [1, 1, 1]} : vector<10x10x16xbf16> to vector<8x8x16xbf16>
    %23 = vector.shape_cast %22 : vector<8x8x16xbf16> to vector<64x16xbf16>
    %c0_29 = arith.constant 0 : index
    %c0_30 = arith.constant 0 : index
    %c0_31 = arith.constant 0 : index
    %c0_32 = arith.constant 0 : index
    %c0_33 = arith.constant 0 : index
    %24 = vector.load %arg1[%c0_29, %c0_30, %c0_31, %c0_32, %c0_33] : memref<1x1x10x10x16xbf16, #tpu.memory_space<vmem>>, vector<1x1x10x10x16xbf16>
    %25 = vector.shape_cast %24 : vector<1x1x10x10x16xbf16> to vector<10x10x16xbf16>
    %26 = vector.extract_strided_slice %25 {offsets = [2, 0, 0], sizes = [8, 8, 16], strides = [1, 1, 1]} : vector<10x10x16xbf16> to vector<8x8x16xbf16>
    %27 = vector.shape_cast %26 : vector<8x8x16xbf16> to vector<64x16xbf16>
    %c0_34 = arith.constant 0 : index
    %c0_35 = arith.constant 0 : index
    %c0_36 = arith.constant 0 : index
    %c0_37 = arith.constant 0 : index
    %c0_38 = arith.constant 0 : index
    %28 = vector.load %arg1[%c0_34, %c0_35, %c0_36, %c0_37, %c0_38] : memref<1x1x10x10x16xbf16, #tpu.memory_space<vmem>>, vector<1x1x10x10x16xbf16>
    %29 = vector.shape_cast %28 : vector<1x1x10x10x16xbf16> to vector<10x10x16xbf16>
    %30 = vector.extract_strided_slice %29 {offsets = [2, 1, 0], sizes = [8, 8, 16], strides = [1, 1, 1]} : vector<10x10x16xbf16> to vector<8x8x16xbf16>
    %31 = vector.shape_cast %30 : vector<8x8x16xbf16> to vector<64x16xbf16>
    %c0_39 = arith.constant 0 : index
    %c0_40 = arith.constant 0 : index
    %c0_41 = arith.constant 0 : index
    %c0_42 = arith.constant 0 : index
    %c0_43 = arith.constant 0 : index
    %32 = vector.load %arg1[%c0_39, %c0_40, %c0_41, %c0_42, %c0_43] : memref<1x1x10x10x16xbf16, #tpu.memory_space<vmem>>, vector<1x1x10x10x16xbf16>
    %33 = vector.shape_cast %32 : vector<1x1x10x10x16xbf16> to vector<10x10x16xbf16>
    %34 = vector.extract_strided_slice %33 {offsets = [2, 2, 0], sizes = [8, 8, 16], strides = [1, 1, 1]} : vector<10x10x16xbf16> to vector<8x8x16xbf16>
    %35 = vector.shape_cast %34 : vector<8x8x16xbf16> to vector<64x16xbf16>
    %36 = tpu.concatenate %3, %7, %11, %15, %19, %23, %27, %31, %35 in 1 : vector<64x16xbf16>, vector<64x16xbf16>, vector<64x16xbf16>, vector<64x16xbf16>, vector<64x16xbf16>, vector<64x16xbf16>, vector<64x16xbf16>, vector<64x16xbf16>, vector<64x16xbf16> -> vector<64x144xbf16>
    %c0_44 = arith.constant 0 : index
    %c0_45 = arith.constant 0 : index
    %37 = vector.load %arg2[%c0_44, %c0_45] : memref<144x16xbf16, #tpu.memory_space<vmem>>, vector<144x16xbf16>
    %cst = arith.constant dense<0.000000e+00> : vector<64x16xf32>
    %38 = tpu.matmul %36, %37, %cst {dimension_numbers = #tpu.dot_dimension_numbers<[1], [0], [0], [1], [0, 0, 1, 1], [], []>} : vector<64x144xbf16>, vector<144x16xbf16>, vector<64x16xf32> -> vector<64x16xf32>
    %c0_46 = arith.constant 0 : index
    %c0_47 = arith.constant 0 : index
    %39 = vector.load %arg3[%c0_46, %c0_47] : memref<1x16xf32, #tpu.memory_space<vmem>>, vector<1x16xf32>
    %40 = vector.broadcast %39 : vector<1x16xf32> to vector<64x16xf32>
    %41 = arith.addf %38, %40 : vector<64x16xf32>
    %cst_48 = arith.constant 0.000000e+00 : f32
    %42 = vector.broadcast %cst_48 : f32 to vector<64x16xf32>
    %43 = arith.maximumf %41, %42 : vector<64x16xf32>
    %44 = arith.truncf %43 : vector<64x16xf32> to vector<64x16xbf16>
    %c0_49 = arith.constant 0 : index
    %c0_50 = arith.constant 0 : index
    %c0_51 = arith.constant 0 : index
    %45 = vector.load %arg4[%c0_49, %c0_50, %c0_51] : memref<1x64x16xbf16, #tpu.memory_space<vmem>>, vector<1x64x16xbf16>
    %46 = vector.shape_cast %45 : vector<1x64x16xbf16> to vector<64x16xbf16>
    %47 = vector.shape_cast %44 : vector<64x16xbf16> to vector<1x64x16xbf16>
    tpu.vector_store %arg4[%c0_49, %c0_50, %c0_51], %47 {strides = array<i32>} : memref<1x64x16xbf16, #tpu.memory_space<vmem>>, vector<1x64x16xbf16>,
    return
  }
  func.func @transform_0(%arg0: i32) -> (i32, i32, i32, i32, i32) {
    %c0_i32 = arith.constant 0 : i32
    %c0_i32_0 = arith.constant 0 : i32
    %c0_i32_1 = arith.constant 0 : i32
    %c0_i32_2 = arith.constant 0 : i32
    %c0_i32_3 = arith.constant 0 : i32
    return %arg0, %c0_i32, %c0_i32_0, %c0_i32_1, %c0_i32_2 : i32, i32, i32, i32, i32
  }
  func.func @transform_1(%arg0: i32) -> (i32, i32) {
    %c0_i32 = arith.constant 0 : i32
    %c0_i32_0 = arith.constant 0 : i32
    %c0_i32_1 = arith.constant 0 : i32
    return %c0_i32, %c0_i32_0 : i32, i32
  }
  func.func @transform_2(%arg0: i32) -> (i32, i32) {
    %c0_i32 = arith.constant 0 : i32
    %c0_i32_0 = arith.constant 0 : i32
    %c0_i32_1 = arith.constant 0 : i32
    return %c0_i32, %c0_i32_0 : i32, i32
  }
  func.func @transform_3(%arg0: i32) -> (i32, i32, i32) {
    %c0_i32 = arith.constant 0 : i32
    %c0_i32_0 = arith.constant 0 : i32
    %c0_i32_1 = arith.constant 0 : i32
    return %arg0, %c0_i32, %c0_i32_0 : i32, i32, i32
  }
}

module attributes {stable_mosaic.version = 11 : i64} {
  func.func @_gemm_bn_res_kernel(%arg0: i32, %arg1: i32, %arg2: memref<64x16xbf16, #tpu.memory_space<vmem>>, %arg3: memref<16x64xbf16, #tpu.memory_space<vmem>>, %arg4: memref<1x64xf32, #tpu.memory_space<vmem>>, %arg5: memref<64x64xbf16, #tpu.memory_space<vmem>>, %arg6: memref<64x64xbf16, #tpu.memory_space<vmem>>) attributes {dimension_semantics = [#tpu.dimension_semantics<parallel>, #tpu.dimension_semantics<parallel>], iteration_bounds = array<i64: 2, 1>, scalar_prefetch = 0 : i64, scratch_operands = 0 : i64, tpu.core_type = #tpu.core_type<tc>, window_params = [{transform_indices = @transform_0, window_bounds = array<i64: 64, 16>}, {transform_indices = @transform_1, window_bounds = array<i64: 16, 64>}, {transform_indices = @transform_2, window_bounds = array<i64: 1, 64>}, {transform_indices = @transform_3, window_bounds = array<i64: 64, 64>}, {transform_indices = @transform_4, window_bounds = array<i64: 64, 64>}]} {
    %c0 = arith.constant 0 : index
    %c0_0 = arith.constant 0 : index
    %0 = vector.load %arg2[%c0, %c0_0] : memref<64x16xbf16, #tpu.memory_space<vmem>>, vector<64x16xbf16>
    %c0_1 = arith.constant 0 : index
    %c0_2 = arith.constant 0 : index
    %1 = vector.load %arg3[%c0_1, %c0_2] : memref<16x64xbf16, #tpu.memory_space<vmem>>, vector<16x64xbf16>
    %cst = arith.constant dense<0.000000e+00> : vector<64x64xf32>
    %2 = tpu.matmul %0, %1, %cst {dimension_numbers = #tpu.dot_dimension_numbers<[1], [0], [0], [1], [0, 0, 1, 1], [], []>} : vector<64x16xbf16>, vector<16x64xbf16>, vector<64x64xf32> -> vector<64x64xf32>
    %c0_3 = arith.constant 0 : index
    %c0_4 = arith.constant 0 : index
    %3 = vector.load %arg4[%c0_3, %c0_4] : memref<1x64xf32, #tpu.memory_space<vmem>>, vector<1x64xf32>
    %4 = vector.broadcast %3 : vector<1x64xf32> to vector<64x64xf32>
    %5 = arith.addf %2, %4 : vector<64x64xf32>
    %c0_5 = arith.constant 0 : index
    %c0_6 = arith.constant 0 : index
    %6 = vector.load %arg5[%c0_5, %c0_6] : memref<64x64xbf16, #tpu.memory_space<vmem>>, vector<64x64xbf16>
    %7 = arith.extf %6 : vector<64x64xbf16> to vector<64x64xf32>
    %8 = arith.addf %5, %7 : vector<64x64xf32>
    %9 = arith.truncf %8 : vector<64x64xf32> to vector<64x64xbf16>
    %c0_7 = arith.constant 0 : index
    %c0_8 = arith.constant 0 : index
    %10 = vector.load %arg6[%c0_7, %c0_8] : memref<64x64xbf16, #tpu.memory_space<vmem>>, vector<64x64xbf16>
    tpu.vector_store %arg6[%c0_7, %c0_8], %9 {strides = array<i32>} : memref<64x64xbf16, #tpu.memory_space<vmem>>, vector<64x64xbf16>,
    return
  }
  func.func @transform_0(%arg0: i32, %arg1: i32) -> (i32, i32) {
    %c0_i32 = arith.constant 0 : i32
    %c0_i32_0 = arith.constant 0 : i32
    return %arg0, %c0_i32 : i32, i32
  }
  func.func @transform_1(%arg0: i32, %arg1: i32) -> (i32, i32) {
    %c0_i32 = arith.constant 0 : i32
    %c0_i32_0 = arith.constant 0 : i32
    return %c0_i32, %arg1 : i32, i32
  }
  func.func @transform_2(%arg0: i32, %arg1: i32) -> (i32, i32) {
    %c0_i32 = arith.constant 0 : i32
    %c0_i32_0 = arith.constant 0 : i32
    return %c0_i32, %arg1 : i32, i32
  }
  func.func @transform_3(%arg0: i32, %arg1: i32) -> (i32, i32) {
    %c0_i32 = arith.constant 0 : i32
    return %arg0, %arg1 : i32, i32
  }
  func.func @transform_4(%arg0: i32, %arg1: i32) -> (i32, i32) {
    %c0_i32 = arith.constant 0 : i32
    return %arg0, %arg1 : i32, i32
  }
}

</mosaic_0001>

<bundles_post_ra>
// kernel: mul.48
= control target key start
LH: loop header
LB: loop body
LE: loop exit
PB: predicated region body
PF: predicated region fallthrough
CT: control target
= control target key end

     0   :  { %s56_s0 = inlined_call_operand.vmem [shape: f32[16,32,1,1], index: 0, kind: input, shape index: {}]   ;;  %s57_s1 = inlined_call_operand.vmem [shape: f32[16,32,1,1], index: 1, kind: input, shape index: {}]   ;;  %s58_s2 = inlined_call_operand.vmem [shape: f32[16,32,1,1], index: 2, kind: output, shape index: {}]  }
   0x1   :  { %v3_v0 = vld [vmem:[%s56_s0] sm:$0xff]  ;;  %v20_v2 = vld [vmem:[%s56_s0 + $0x8] sm:$0xff] }
   0x2   :  { %v4_v1 = vld [vmem:[%s57_s1] sm:$0xff]  ;;  %v21_v4 = vld [vmem:[%s57_s1 + $0x8] sm:$0xff] }
   0x3   :  { %v7_v3 = vmul.f32 %v4_v1, %v3_v0  ;;  %v16_v5 = vmul.f32 %v21_v4, %v20_v2 }
   0x5   :  { %9 = vst [vmem:[%s58_s2] sm:$0xff] %v7_v3  ;;  %22 = vst [vmem:[%s58_s2 + $0x8] sm:$0xff] %v16_v5 }

// kernel: mul.75
= control target key start
LH: loop header
LB: loop body
LE: loop exit
PB: predicated region body
PF: predicated region fallthrough
CT: control target
= control target key end

     0   :  { %s56_s0 = inlined_call_operand.vmem [shape: f32[16,64,1,1], index: 0, kind: input, shape index: {}]   ;;  %s57_s1 = inlined_call_operand.vmem [shape: f32[16,64,1,1], index: 1, kind: input, shape index: {}]   ;;  %s58_s2 = inlined_call_operand.vmem [shape: f32[16,64,1,1], index: 2, kind: output, shape index: {}]  }
   0x1   :  { %v3_v0 = vld [vmem:[%s56_s0] sm:$0xff]  ;;  %v20_v2 = vld [vmem:[%s56_s0 + $0x8] sm:$0xff] }
   0x2   :  { %v4_v1 = vld [vmem:[%s57_s1] sm:$0xff]  ;;  %v21_v4 = vld [vmem:[%s57_s1 + $0x8] sm:$0xff] }
   0x3   :  { %v7_v3 = vmul.f32 %v4_v1, %v3_v0  ;;  %v16_v5 = vmul.f32 %v21_v4, %v20_v2 }
   0x5   :  { %9 = vst [vmem:[%s58_s2] sm:$0xff] %v7_v3  ;;  %22 = vst [vmem:[%s58_s2 + $0x8] sm:$0xff] %v16_v5 }

// kernel: fwd.6
= control target key start
LH: loop header
LB: loop body
LE: loop exit
PB: predicated region body
PF: predicated region fallthrough
CT: control target
= control target key end

     0   :  { %s1122_s12 = smov 0   ;;  %s1124_s13 = smov 0   ;;  %s1305_s0 = inlined_call_operand.vmem [shape: bf16[512,32], index: 0, kind: input, shape index: {}]   ;;  %s1306_s1 = inlined_call_operand.vmem [shape: bf16[32,16], index: 1, kind: input, shape index: {}]   ;;  %s1307_s2 = inlined_call_operand.vmem [shape: f32[1,16], index: 2, kind: input, shape index: {}]   ;;  %s1308_s3 = inlined_call_operand.vmem [shape: bf16[512,16], index: 3, kind: output, shape index: {}]  }
   0x1   :  { %s1126_s14 = smov 0  }
   0x2 LB: > { %s25_s15 = sadd.s32 1, %s1096_s13  ;;  %p872_p0 = scmp.ge.s32.totalorder %s1100_s14, 1  ;;  %s1100_s14 = sphi %s1126_s14, %s13_s14   ;;  %s1096_s13 = sphi %s1124_s13, %s1310_s13   ;;  %s1092_s12 = sphi %s1122_s12, %s1309_s12  }
   0x3   : > { %p27_p1 = scmp.ge.s32.totalorder %s25_s15, 2  ;;  %p169_p2 = scmp.lt.s32.totalorder %s1100_s14, 3 }
   0x5   : > { %s1312_s15 = smov (%p27_p1, %s25_s15), 0  ;;  %p170_p3 = pnand %p872_p0, %p169_p2 }
   0x6   : > { %s873_s18 = sshll.u32 (!%p170_p3), %s1092_s12, 5 }
   0x7   : > { %173 = sbr.rel (%p170_p3) target bundleno = 251 (0xfb), region = 32  ;;  %p204_p4 = scmp.lt.s32.totalorder (!%p170_p3), %s873_s18, 63 }
   0xc   : > { %v1060_v0 = vld [vmem:[%s1306_s1 + $0x8] sm:$0xff]   ;;  %v1061_v1 = vld [vmem:[%s1306_s1] sm:$0xff]   ;;  %s1314_s18 = smov (!%p204_p4, %s873_s18), 63  ;;  %vm361_vm0 = vcmask 261120   ;;  %vm731_vm1 = vcmask 125952  }
   0xd   : > { %996 = vmatprep.subr.bf16.mxu0 %v1060_v0  ;;  %1032 = vmatprep.subr.bf16.mxu1 %v1060_v0  ;;  %s874_s21 = sshll.u32 %s1314_s18, 2  ;;  %v1191_v18 = vld [vmem:[%s1307_s2] ss:$0 sm:$0xff] }
   0xe   : > { %997 = vmatpush3.bf16.msra.mxu0 %v1060_v0  ;;  %1034 = vmatpush3.bf16.msra.mxu1 %v1060_v0  ;;  %s1154_s24 = scalar_lea.vmem %s1305_s0, %s874_s21  ;;  %s1201_s29 = scalar_lea.vmem %s1308_s3, %s874_s21 }
   0xf   : > { %998 = vmatprep.subr.bf16.mxu0 %v1061_v1  ;;  %1033 = vmatprep.subr.bf16.mxu1 %v1061_v1  ;;  %v1062_v2 = vld [vmem:[%s1154_s24] sm:$0xff]   ;;  %v1064_v4 = vld [vmem:[%s1154_s24 + $0x8] sm:$0xff]   ;;  %v1066_v6 = vld [vmem:[%s1154_s24 + $0x10] sm:$0xff]  }
  0x10   : > { %v1063_v3 = vld [vmem:[%s1154_s24 + $0x40] sm:$0xff]   ;;  %1000 = vmatprep.mubr.msk.bf16.mxu0 %vm361_vm0, %v1062_v2  ;;  %v1065_v5 = vld [vmem:[%s1154_s24 + $0x48] sm:$0xff]   ;;  %v1067_v7 = vld [vmem:[%s1154_s24 + $0x50] sm:$0xff]  }
  0x11   : > { %1016 = vmatprep.mubr.msk.bf16.mxu1 %vm361_vm0, %v1063_v3  ;;  %v1068_v8 = vld [vmem:[%s1154_s24 + $0x18] sm:$0xff]   ;;  %v1070_v10 = vld [vmem:[%s1154_s24 + $0x20] sm:$0xff]   ;;  %v1072_v12 = vld [vmem:[%s1154_s24 + $0x28] sm:$0xff]  }
  0x12   : > { %999 = vmatpush3.bf16.msra.mxu0 %v1061_v1  ;;  %1035 = vmatpush3.bf16.msra.mxu1 %v1061_v1  ;;  %v1069_v9 = vld [vmem:[%s1154_s24 + $0x58] sm:$0xff]   ;;  %v1071_v11 = vld [vmem:[%s1154_s24 + $0x60] sm:$0xff]   ;;  %v1073_v13 = vld [vmem:[%s1154_s24 + $0x68] sm:$0xff]  }
  0x13   : > { %v1074_v14 = vld [vmem:[%s1154_s24 + $0x30] sm:$0xff]   ;;  %v1076_v16 = vld [vmem:[%s1154_s24 + $0x38] sm:$0xff]  }
  0x14   : > { %v1075_v15 = vld [vmem:[%s1154_s24 + $0x70] sm:$0xff]   ;;  %v1077_v17 = vld [vmem:[%s1154_s24 + $0x78] sm:$0xff]  }
  0x15   : > { %1001 = vmatmul.mubr.msk.bf16.vlgmr.msra.gmra.mxu0 %vm361_vm0, %v1064_v4  ;;  %1017 = vmatmul.mubr.msk.bf16.vlgmr.msra.gmra.mxu1 %vm361_vm0, %v1065_v5 }
  0x16   : > { %1004 = vmatprep.mubr.msk.bf16.mxu0 %vm361_vm0, %v1066_v6  ;;  %1020 = vmatprep.mubr.msk.bf16.mxu1 %vm361_vm0, %v1067_v7 }
  0x1d   : > { %1005 = vmatmul.mubr.msk.bf16.gmra.mxu0 %vm361_vm0, %v1068_v8  ;;  %1021 = vmatmul.mubr.msk.bf16.gmra.mxu1 %vm361_vm0, %v1069_v9 }
  0x1e   : > { %1008 = vmatprep.mubr.msk.bf16.mxu0 %vm361_vm0, %v1070_v10  ;;  %1024 = vmatprep.mubr.msk.bf16.mxu1 %vm361_vm0, %v1071_v11 }
  0x25   : > { %1009 = vmatmul.mubr.msk.bf16.gmra.mxu0 %vm361_vm0, %v1072_v12  ;;  %1025 = vmatmul.mubr.msk.bf16.gmra.mxu1 %vm361_vm0, %v1073_v13 }
  0x26   : > { %1012 = vmatprep.mubr.msk.bf16.mxu0 %vm361_vm0, %v1074_v14  ;;  %1028 = vmatprep.mubr.msk.bf16.mxu1 %vm361_vm0, %v1075_v15 }
  0x2d   : > { %1013 = vmatmul.mubr.msk.bf16.gmra.mxu0 %vm361_vm0, %v1076_v16  ;;  %1029 = vmatmul.mubr.msk.bf16.gmra.mxu1 %vm361_vm0, %v1077_v17 }
  0xd5   : > { %v1002_v19 = vpop.f32.mrf.mxu0  ;;  %v1018_v21 = vpop.f32.mrf.mxu1 }
  0xd6   : > { %v453_v20 = vadd.f32 %v1002_v19, %v1191_v18  ;;  %v517_v22 = vadd.f32 %v1018_v21, %v1191_v18 }
  0xd7   : > { %v444_v23 = vpop.f32.mrf.mxu0  ;;  %v508_v26 = vpop.f32.mrf.mxu1 }
  0xd8   : > { %v573_v24 = vmax.f32 %v453_v20, 0.0  ;;  %v445_v25 = vadd.f32 %v1191_v18, %v444_v23  ;;  %v589_v27 = vmax.f32 %v517_v22, 0.0  ;;  %v509_v28 = vadd.f32 %v1191_v18, %v508_v26 }
  0xd9   : > { %v1003_v29 = vpop.f32.mrf.mxu0  ;;  %v1019_v33 = vpop.f32.mrf.mxu1 }
  0xda   : > { %v948_v30 = vpack.c.bf16 %v573_v24, %v573_v24  ;;  %v571_v31 = vmax.f32 %v445_v25, 0.0  ;;  %v456_v32 = vadd.f32 %v1003_v29, %v1191_v18  ;;  %v964_v34 = vpack.c.bf16 %v589_v27, %v589_v27 }
  0xdb   : > { %v587_v35 = vmax.f32 %v509_v28, 0.0  ;;  %v520_v36 = vadd.f32 %v1019_v33, %v1191_v18  ;;  %v447_v37 = vpop.f32.mrf.mxu0  ;;  %v511_v41 = vpop.f32.mrf.mxu1 }
  0xdc   : > { %734 = vst.msk [vmem:[%s1201_s29 + $0x8] sm:$0xf] %vm731_vm1, %v948_v30  ;;  %v946_v38 = vpack.c.bf16 %v571_v31, %v571_v31  ;;  %v574_v39 = vmax.f32 %v456_v32, 0.0  ;;  %v448_v40 = vadd.f32 %v1191_v18, %v447_v37  ;;  %750 = vst.msk [vmem:[%s1201_s29 + $0x48] sm:$0xf] %vm731_vm1, %v964_v34  ;;  %v512_v44 = vadd.f32 %v1191_v18, %v511_v41 }
  0xdd   : > { %v962_v42 = vpack.c.bf16 %v587_v35, %v587_v35  ;;  %v590_v43 = vmax.f32 %v520_v36, 0.0  ;;  %v1006_v45 = vpop.f32.mrf.mxu0  ;;  %v1022_v49 = vpop.f32.mrf.mxu1 }
  0xde   : > { %732 = vst.msk [vmem:[%s1201_s29] sm:$0xf] %vm731_vm1, %v946_v38  ;;  %v949_v46 = vpack.c.bf16 %v574_v39, %v574_v39  ;;  %v572_v47 = vmax.f32 %v448_v40, 0.0  ;;  %v469_v48 = vadd.f32 %v1006_v45, %v1191_v18  ;;  %v588_v51 = vmax.f32 %v512_v44, 0.0 }
  0xdf   : > { %748 = vst.msk [vmem:[%s1201_s29 + $0x40] sm:$0xf] %vm731_vm1, %v962_v42  ;;  %v965_v50 = vpack.c.bf16 %v590_v43, %v590_v43  ;;  %v533_v52 = vadd.f32 %v1022_v49, %v1191_v18  ;;  %v460_v53 = vpop.f32.mrf.mxu0  ;;  %v524_v57 = vpop.f32.mrf.mxu1 }
  0xe0   : > { %735 = vst.msk [vmem:[%s1201_s29 + $0xc] sm:$0xf] %vm731_vm1, %v949_v46  ;;  %v947_v54 = vpack.c.bf16 %v572_v47, %v572_v47  ;;  %v577_v55 = vmax.f32 %v469_v48, 0.0  ;;  %v461_v56 = vadd.f32 %v1191_v18, %v460_v53  ;;  %v963_v58 = vpack.c.bf16 %v588_v51, %v588_v51 }
  0xe1   : > { %751 = vst.msk [vmem:[%s1201_s29 + $0x4c] sm:$0xf] %vm731_vm1, %v965_v50  ;;  %v593_v59 = vmax.f32 %v533_v52, 0.0  ;;  %v525_v60 = vadd.f32 %v1191_v18, %v524_v57  ;;  %v1007_v61 = vpop.f32.mrf.mxu0  ;;  %v1023_v1 = vpop.f32.mrf.mxu1 }
  0xe2   : > { %733 = vst.msk [vmem:[%s1201_s29 + $0x4] sm:$0xf] %vm731_vm1, %v947_v54  ;;  %v952_v62 = vpack.c.bf16 %v577_v55, %v577_v55  ;;  %v575_v63 = vmax.f32 %v461_v56, 0.0  ;;  %v472_v0 = vadd.f32 %v1007_v61, %v1191_v18  ;;  %749 = vst.msk [vmem:[%s1201_s29 + $0x44] sm:$0xf] %vm731_vm1, %v963_v58  ;;  %v536_v4 = vadd.f32 %v1023_v1, %v1191_v18 }
  0xe3   : > { %v968_v2 = vpack.c.bf16 %v593_v59, %v593_v59  ;;  %v591_v3 = vmax.f32 %v525_v60, 0.0  ;;  %v463_v5 = vpop.f32.mrf.mxu0  ;;  %v527_v9 = vpop.f32.mrf.mxu1 }
  0xe4   : > { %738 = vst.msk [vmem:[%s1201_s29 + $0x18] sm:$0xf] %vm731_vm1, %v952_v62  ;;  %v950_v6 = vpack.c.bf16 %v575_v63, %v575_v63  ;;  %v578_v7 = vmax.f32 %v472_v0, 0.0  ;;  %v464_v8 = vadd.f32 %v1191_v18, %v463_v5  ;;  %v594_v11 = vmax.f32 %v536_v4, 0.0 }
  0xe5   : > { %754 = vst.msk [vmem:[%s1201_s29 + $0x58] sm:$0xf] %vm731_vm1, %v968_v2  ;;  %v966_v10 = vpack.c.bf16 %v591_v3, %v591_v3  ;;  %v528_v12 = vadd.f32 %v1191_v18, %v527_v9  ;;  %v1010_v13 = vpop.f32.mrf.mxu0  ;;  %v1026_v17 = vpop.f32.mrf.mxu1 }
  0xe6   : > { %736 = vst.msk [vmem:[%s1201_s29 + $0x10] sm:$0xf] %vm731_vm1, %v950_v6  ;;  %v953_v14 = vpack.c.bf16 %v578_v7, %v578_v7  ;;  %v576_v15 = vmax.f32 %v464_v8, 0.0  ;;  %v485_v16 = vadd.f32 %v1010_v13, %v1191_v18  ;;  %v969_v19 = vpack.c.bf16 %v594_v11, %v594_v11 }
  0xe7   : > { %752 = vst.msk [vmem:[%s1201_s29 + $0x50] sm:$0xf] %vm731_vm1, %v966_v10  ;;  %v592_v20 = vmax.f32 %v528_v12, 0.0  ;;  %v549_v21 = vadd.f32 %v1026_v17, %v1191_v18  ;;  %v476_v22 = vpop.f32.mrf.mxu0  ;;  %v540_v26 = vpop.f32.mrf.mxu1 }
  0xe8   : > { %739 = vst.msk [vmem:[%s1201_s29 + $0x1c] sm:$0xf] %vm731_vm1, %v953_v14  ;;  %v951_v23 = vpack.c.bf16 %v576_v15, %v576_v15  ;;  %v581_v24 = vmax.f32 %v485_v16, 0.0  ;;  %v477_v25 = vadd.f32 %v1191_v18, %v476_v22  ;;  %755 = vst.msk [vmem:[%s1201_s29 + $0x5c] sm:$0xf] %vm731_vm1, %v969_v19  ;;  %v541_v29 = vadd.f32 %v1191_v18, %v540_v26 }
  0xe9   : > { %v967_v27 = vpack.c.bf16 %v592_v20, %v592_v20  ;;  %v597_v28 = vmax.f32 %v549_v21, 0.0  ;;  %v1011_v30 = vpop.f32.mrf.mxu0  ;;  %v1027_v34 = vpop.f32.mrf.mxu1 }
  0xea   : > { %737 = vst.msk [vmem:[%s1201_s29 + $0x14] sm:$0xf] %vm731_vm1, %v951_v23  ;;  %v956_v31 = vpack.c.bf16 %v581_v24, %v581_v24  ;;  %v579_v32 = vmax.f32 %v477_v25, 0.0  ;;  %v488_v33 = vadd.f32 %v1011_v30, %v1191_v18  ;;  %v595_v36 = vmax.f32 %v541_v29, 0.0 }
  0xeb   : > { %753 = vst.msk [vmem:[%s1201_s29 + $0x54] sm:$0xf] %vm731_vm1, %v967_v27  ;;  %v972_v35 = vpack.c.bf16 %v597_v28, %v597_v28  ;;  %v552_v37 = vadd.f32 %v1027_v34, %v1191_v18  ;;  %v479_v38 = vpop.f32.mrf.mxu0  ;;  %v543_v42 = vpop.f32.mrf.mxu1 }
  0xec   : > { %742 = vst.msk [vmem:[%s1201_s29 + $0x28] sm:$0xf] %vm731_vm1, %v956_v31  ;;  %v954_v39 = vpack.c.bf16 %v579_v32, %v579_v32  ;;  %v582_v40 = vmax.f32 %v488_v33, 0.0  ;;  %v480_v41 = vadd.f32 %v1191_v18, %v479_v38  ;;  %v970_v43 = vpack.c.bf16 %v595_v36, %v595_v36 }
  0xed   : > { %758 = vst.msk [vmem:[%s1201_s29 + $0x68] sm:$0xf] %vm731_vm1, %v972_v35  ;;  %v598_v44 = vmax.f32 %v552_v37, 0.0  ;;  %v544_v45 = vadd.f32 %v1191_v18, %v543_v42  ;;  %v1014_v46 = vpop.f32.mrf.mxu0  ;;  %v1030_v50 = vpop.f32.mrf.mxu1 }
  0xee   : > { %740 = vst.msk [vmem:[%s1201_s29 + $0x20] sm:$0xf] %vm731_vm1, %v954_v39  ;;  %v957_v47 = vpack.c.bf16 %v582_v40, %v582_v40  ;;  %v580_v48 = vmax.f32 %v480_v41, 0.0  ;;  %v501_v49 = vadd.f32 %v1014_v46, %v1191_v18  ;;  %756 = vst.msk [vmem:[%s1201_s29 + $0x60] sm:$0xf] %vm731_vm1, %v970_v43  ;;  %v565_v53 = vadd.f32 %v1030_v50, %v1191_v18 }
  0xef   : > { %v973_v51 = vpack.c.bf16 %v598_v44, %v598_v44  ;;  %v596_v52 = vmax.f32 %v544_v45, 0.0  ;;  %v492_v54 = vpop.f32.mrf.mxu0  ;;  %v556_v58 = vpop.f32.mrf.mxu1 }
  0xf0   : > { %743 = vst.msk [vmem:[%s1201_s29 + $0x2c] sm:$0xf] %vm731_vm1, %v957_v47  ;;  %v955_v55 = vpack.c.bf16 %v580_v48, %v580_v48  ;;  %v585_v56 = vmax.f32 %v501_v49, 0.0  ;;  %v493_v57 = vadd.f32 %v1191_v18, %v492_v54  ;;  %v601_v60 = vmax.f32 %v565_v53, 0.0 }
  0xf1   : > { %759 = vst.msk [vmem:[%s1201_s29 + $0x6c] sm:$0xf] %vm731_vm1, %v973_v51  ;;  %v971_v59 = vpack.c.bf16 %v596_v52, %v596_v52  ;;  %v557_v61 = vadd.f32 %v1191_v18, %v556_v58  ;;  %v1015_v62 = vpop.f32.mrf.mxu0  ;;  %v1031_v2 = vpop.f32.mrf.mxu1 }
  0xf2   : > { %741 = vst.msk [vmem:[%s1201_s29 + $0x24] sm:$0xf] %vm731_vm1, %v955_v55  ;;  %v960_v63 = vpack.c.bf16 %v585_v56, %v585_v56  ;;  %v583_v0 = vmax.f32 %v493_v57, 0.0  ;;  %v504_v1 = vadd.f32 %v1015_v62, %v1191_v18  ;;  %v976_v3 = vpack.c.bf16 %v601_v60, %v601_v60 }
  0xf3   : > { %757 = vst.msk [vmem:[%s1201_s29 + $0x64] sm:$0xf] %vm731_vm1, %v971_v59  ;;  %v599_v4 = vmax.f32 %v557_v61, 0.0  ;;  %v568_v5 = vadd.f32 %v1031_v2, %v1191_v18  ;;  %v495_v6 = vpop.f32.mrf.mxu0  ;;  %v559_v10 = vpop.f32.mrf.mxu1 }
  0xf4   : > { %746 = vst.msk [vmem:[%s1201_s29 + $0x38] sm:$0xf] %vm731_vm1, %v960_v63  ;;  %v958_v7 = vpack.c.bf16 %v583_v0, %v583_v0  ;;  %v586_v8 = vmax.f32 %v504_v1, 0.0  ;;  %v496_v9 = vadd.f32 %v1191_v18, %v495_v6  ;;  %762 = vst.msk [vmem:[%s1201_s29 + $0x78] sm:$0xf] %vm731_vm1, %v976_v3  ;;  %v560_v13 = vadd.f32 %v1191_v18, %v559_v10 }
  0xf5   : > { %v974_v11 = vpack.c.bf16 %v599_v4, %v599_v4  ;;  %v602_v12 = vmax.f32 %v568_v5, 0.0 }
  0xf6   : > { %744 = vst.msk [vmem:[%s1201_s29 + $0x30] sm:$0xf] %vm731_vm1, %v958_v7  ;;  %v961_v14 = vpack.c.bf16 %v586_v8, %v586_v8  ;;  %v584_v15 = vmax.f32 %v496_v9, 0.0  ;;  %v600_v17 = vmax.f32 %v560_v13, 0.0 }
  0xf7   : > { %760 = vst.msk [vmem:[%s1201_s29 + $0x70] sm:$0xf] %vm731_vm1, %v974_v11  ;;  %v977_v16 = vpack.c.bf16 %v602_v12, %v602_v12 }
  0xf8   : > { %747 = vst.msk [vmem:[%s1201_s29 + $0x3c] sm:$0xf] %vm731_vm1, %v961_v14  ;;  %v959_v19 = vpack.c.bf16 %v584_v15, %v584_v15  ;;  %v975_v20 = vpack.c.bf16 %v600_v17, %v600_v17 }
  0xf9   : > { %763 = vst.msk [vmem:[%s1201_s29 + $0x7c] sm:$0xf] %vm731_vm1, %v977_v16 }
  0xfa   : > { %745 = vst.msk [vmem:[%s1201_s29 + $0x34] sm:$0xf] %vm731_vm1, %v959_v19  ;;  %761 = vst.msk [vmem:[%s1201_s29 + $0x74] sm:$0xf] %vm731_vm1, %v975_v20 }
  0xfb PF: > { %s13_s14 = sadd.s32 1, %s1100_s14   ;;  %s1309_s12 = smov %s1096_s13 }
  0xfc   : > { %p10_p5 = scmp.ge.s32.totalorder %s13_s14, 4   ;;  %s1310_s13 = smov %s1312_s15 }
  0xfe   :  { %12 = sbr.rel (!%p10_p5) target bundleno = 2 (0x2), region = 68 }

// kernel: fwd.8
= control target key start
LH: loop header
LB: loop body
LE: loop exit
PB: predicated region body
PF: predicated region fallthrough
CT: control target
= control target key end

     0   :  { %s997_s21 = smov 0   ;;  %s999_s22 = smov 0   ;;  %s1075_s0 = inlined_call_operand.vmem [shape: bf16[128,16], index: 0, kind: input, shape index: {}]   ;;  %s1076_s1 = inlined_call_operand.vmem [shape: bf16[16,64], index: 1, kind: input, shape index: {}]   ;;  %s1077_s2 = inlined_call_operand.vmem [shape: f32[1,64], index: 2, kind: input, shape index: {}]   ;;  %s1078_s3 = inlined_call_operand.vmem [shape: bf16[128,32], index: 3, kind: input, shape index: {}]   ;;  %s1079_s4 = inlined_call_operand.vmem [shape: bf16[32,64], index: 4, kind: input, shape index: {}]   ;;  %s1080_s5 = inlined_call_operand.vmem [shape: f32[1,64], index: 5, kind: input, shape index: {}]   ;;  %s1081_s6 = inlined_call_operand.vmem [shape: bf16[128,64], index: 6, kind: output, shape index: {}]  }
   0x1   :  { %s1001_s23 = smov 0  }
   0x2 LB: > { %s28_s24 = sadd.s32 1, %s956_s22  ;;  %p824_p0 = scmp.ge.s32.totalorder %s960_s23, 1  ;;  %s960_s23 = sphi %s1001_s23, %s16_s23   ;;  %s956_s22 = sphi %s999_s22, %s1083_s22   ;;  %s952_s21 = sphi %s997_s21, %s1082_s21  }
   0x3   : > { %p30_p1 = scmp.ge.s32.totalorder %s28_s24, 2  ;;  %p272_p2 = scmp.lt.s32.totalorder %s960_s23, 3 }
   0x5   : > { %s1085_s24 = smov (%p30_p1, %s28_s24), 0  ;;  %p273_p3 = pnand %p824_p0, %p272_p2 }
   0x6   : > { %s825_s27 = sshll.u32 (!%p273_p3), %s952_s21, 3 }
   0x7   : > { %276 = sbr.rel (%p273_p3) target bundleno = 239 (0xef), region = 44  ;;  %p325_p4 = scmp.lt.s32.totalorder (!%p273_p3), %s825_s27, 15 }
   0xc   : > { %v927_v0 = vld [vmem:[%s1079_s4 + $0x8] sm:$0xff]   ;;  %v928_v1 = vld [vmem:[%s1079_s4] sm:$0xff]   ;;  %s1087_s27 = smov (!%p325_p4, %s825_s27), 15  ;;  %vm414_vm0 = vcmask 261120   ;;  %vm518_vm1 = vcmask 130048   ;;  %vm666_vm2 = vcmask 519168  }
   0xd   : > { %881 = vmatprep.subr.bf16.mxu0 %v927_v0  ;;  %v929_v2 = vld [vmem:[%s1076_s1] sm:$0xff]   ;;  %s1024_s8 = sshll.u32 %s1087_s27, 2 }
   0xe   : > { %882 = vmatpush3.bf16.msra.mxu0 %v927_v0  ;;  %893 = vmatprep.subr.bf16.mxu1 %v929_v2  ;;  %s341_s11 = scalar_lea.vmem %s1078_s3, %s1024_s8  ;;  %s328_s14 = scalar_lea.vmem %s1075_s0, %s1024_s8  ;;  %v850_v13 = vld [vmem:[%s1077_s2] ss:$0 sm:$0xff] }
   0xf   : > { %883 = vmatprep.subr.bf16.mxu0 %v928_v1  ;;  %894 = vmatpush3.bf16.msra.mxu1 %v929_v2  ;;  %v930_v3 = vld [vmem:[%s341_s11] sm:$0xff]   ;;  %v932_v5 = vld [vmem:[%s341_s11 + $0x8] sm:$0xff]   ;;  %v934_v7 = vld [vmem:[%s341_s11 + $0x10] sm:$0xff]   ;;  %s1048_s21 = scalar_lea.vmem %s1081_s6, %s1024_s8 }
  0x10   : > { %v931_v4 = vld [vmem:[%s328_s14] sm:$0xff]   ;;  %885 = vmatprep.mubr.msk.bf16.mxu0 %vm414_vm0, %v930_v3  ;;  %v933_v6 = vld [vmem:[%s328_s14 + $0x8] sm:$0xff]   ;;  %v935_v8 = vld [vmem:[%s328_s14 + $0x10] sm:$0xff]  }
  0x11   : > { %895 = vmatprep.mubr.msk.bf16.mxu1 %vm518_vm1, %v931_v4  ;;  %v936_v9 = vld [vmem:[%s341_s11 + $0x18] sm:$0xff]   ;;  %v851_v16 = vld [vmem:[%s1080_s5] ss:$0 sm:$0xff] }
  0x12   : > { %884 = vmatpush3.bf16.msra.mxu0 %v928_v1  ;;  %896 = vmatmul.mubr.msk.bf16.vlgmr.msra.gmra.mxu1 %vm518_vm1, %v933_v6  ;;  %v937_v10 = vld [vmem:[%s328_s14 + $0x18] sm:$0xff]  }
  0x13   : > { %899 = vmatprep.mubr.msk.bf16.mxu1 %vm518_vm1, %v935_v8 }
  0x15   : > { %886 = vmatmul.mubr.msk.bf16.vlgmr.msra.gmra.mxu0 %vm414_vm0, %v932_v5 }
  0x16   : > { %889 = vmatprep.mubr.msk.bf16.mxu0 %vm414_vm0, %v934_v7 }
  0x1a   : > { %900 = vmatmul.mubr.msk.bf16.gmra.mxu1 %vm518_vm1, %v937_v10 }
  0x1d   : > { %890 = vmatmul.mubr.msk.bf16.gmra.mxu0 %vm414_vm0, %v936_v9 }
  0xd2   : > { %v897_v12 = vpop.f32.mrf.mxu1 }
  0xd4   : > { %v565_v17 = vpop.f32.mrf.mxu1 }
  0xd5   : > { %v887_v11 = vpop.f32.mrf.mxu0 }
  0xd6   : > { %v574_v14 = vadd.f32 %v897_v12, %v887_v11  ;;  %v898_v21 = vpop.f32.mrf.mxu1 }
  0xd7   : > { %v461_v15 = vpop.f32.mrf.mxu0 }
  0xd8   : > { %v605_v18 = vadd.f32 %v850_v13, %v574_v14  ;;  %v566_v19 = vadd.f32 %v565_v17, %v461_v15  ;;  %v568_v26 = vpop.f32.mrf.mxu1 }
  0xd9   : > { %v888_v20 = vpop.f32.mrf.mxu0 }
  0xda   : > { %v620_v22 = vadd.f32 %v851_v16, %v605_v18  ;;  %v603_v23 = vadd.f32 %v850_v13, %v566_v19  ;;  %v577_v24 = vadd.f32 %v898_v21, %v888_v20  ;;  %v901_v32 = vpop.f32.mrf.mxu1 }
  0xdb   : > { %v464_v25 = vpop.f32.mrf.mxu0 }
  0xdc   : > { %v628_v27 = vmax.f32 %v620_v22, 0.0  ;;  %v618_v28 = vadd.f32 %v851_v16, %v603_v23  ;;  %v606_v29 = vadd.f32 %v850_v13, %v577_v24  ;;  %v569_v30 = vadd.f32 %v568_v26, %v464_v25  ;;  %v581_v39 = vpop.f32.mrf.mxu1 }
  0xdd   : > { %v891_v31 = vpop.f32.mrf.mxu0 }
  0xde   : > { %v864_v33 = vpack.c.bf16 %v628_v27, %v628_v27  ;;  %v626_v34 = vmax.f32 %v618_v28, 0.0  ;;  %v621_v35 = vadd.f32 %v851_v16, %v606_v29  ;;  %v604_v36 = vadd.f32 %v850_v13, %v569_v30  ;;  %v902_v46 = vpop.f32.mrf.mxu1 }
  0xdf   : > { %v477_v37 = vpop.f32.mrf.mxu0  ;;  %v590_v38 = vadd.f32 %v901_v32, %v891_v31 }
  0xe0   : > { %669 = vst.msk [vmem:[%s1048_s21 + $0x8] sm:$0xf] %vm666_vm2, %v864_v33  ;;  %v862_v40 = vpack.c.bf16 %v626_v34, %v626_v34  ;;  %v629_v41 = vmax.f32 %v621_v35, 0.0  ;;  %v619_v42 = vadd.f32 %v851_v16, %v604_v36  ;;  %v582_v43 = vadd.f32 %v581_v39, %v477_v37  ;;  %v584_v53 = vpop.f32.mrf.mxu1 }
  0xe1   : > { %v892_v44 = vpop.f32.mrf.mxu0  ;;  %v609_v45 = vadd.f32 %v850_v13, %v590_v38 }
  0xe2   : > { %667 = vst.msk [vmem:[%s1048_s21] sm:$0xf] %vm666_vm2, %v862_v40  ;;  %v865_v47 = vpack.c.bf16 %v629_v41, %v629_v41  ;;  %v627_v48 = vmax.f32 %v619_v42, 0.0  ;;  %v607_v49 = vadd.f32 %v850_v13, %v582_v43  ;;  %v593_v50 = vadd.f32 %v902_v46, %v892_v44 }
  0xe3   : > { %v480_v51 = vpop.f32.mrf.mxu0  ;;  %v624_v52 = vadd.f32 %v851_v16, %v609_v45 }
  0xe4   : > { %670 = vst.msk [vmem:[%s1048_s21 + $0xc] sm:$0xf] %vm666_vm2, %v865_v47  ;;  %v863_v54 = vpack.c.bf16 %v627_v48, %v627_v48  ;;  %v622_v55 = vadd.f32 %v851_v16, %v607_v49  ;;  %v610_v56 = vadd.f32 %v850_v13, %v593_v50  ;;  %v585_v57 = vadd.f32 %v584_v53, %v480_v51 }
  0xe5   : > { %v632_v58 = vmax.f32 %v624_v52, 0.0 }
  0xe6   : > { %668 = vst.msk [vmem:[%s1048_s21 + $0x4] sm:$0xf] %vm666_vm2, %v863_v54  ;;  %v630_v59 = vmax.f32 %v622_v55, 0.0  ;;  %v625_v60 = vadd.f32 %v851_v16, %v610_v56  ;;  %v608_v61 = vadd.f32 %v850_v13, %v585_v57 }
  0xe7   : > { %v868_v62 = vpack.c.bf16 %v632_v58, %v632_v58 }
  0xe8   : > { %v866_v63 = vpack.c.bf16 %v630_v59, %v630_v59  ;;  %v633_v0 = vmax.f32 %v625_v60, 0.0  ;;  %v623_v1 = vadd.f32 %v851_v16, %v608_v61 }
  0xe9   : > { %673 = vst.msk [vmem:[%s1048_s21 + $0x18] sm:$0xf] %vm666_vm2, %v868_v62 }
  0xea   : > { %671 = vst.msk [vmem:[%s1048_s21 + $0x10] sm:$0xf] %vm666_vm2, %v866_v63  ;;  %v869_v2 = vpack.c.bf16 %v633_v0, %v633_v0  ;;  %v631_v3 = vmax.f32 %v623_v1, 0.0 }
  0xec   : > { %674 = vst.msk [vmem:[%s1048_s21 + $0x1c] sm:$0xf] %vm666_vm2, %v869_v2  ;;  %v867_v4 = vpack.c.bf16 %v631_v3, %v631_v3 }
  0xee   : > { %672 = vst.msk [vmem:[%s1048_s21 + $0x14] sm:$0xf] %vm666_vm2, %v867_v4 }
  0xef PF: > { %s16_s23 = sadd.s32 1, %s960_s23   ;;  %s1082_s21 = smov %s956_s22 }
  0xf0   : > { %p13_p5 = scmp.ge.s32.totalorder %s16_s23, 4   ;;  %s1083_s22 = smov %s1085_s24 }
  0xf2   :  { %15 = sbr.rel (!%p13_p5) target bundleno = 2 (0x2), region = 89 }

// kernel: fwd.7
= control target key start
LH: loop header
LB: loop body
LE: loop exit
PB: predicated region body
PF: predicated region fallthrough
CT: control target
= control target key end

     0   :  { %s1189_s12 = smov 0   ;;  %s1572_s0 = inlined_call_operand.vmem [shape: bf16[2,4,9,9,16], index: 0, kind: input, shape index: {}]   ;;  %s1573_s1 = inlined_call_operand.vmem [shape: bf16[144,16], index: 1, kind: input, shape index: {}]   ;;  %s1574_s2 = inlined_call_operand.vmem [shape: f32[1,16], index: 2, kind: input, shape index: {}]   ;;  %s1575_s3 = inlined_call_operand.vmem [shape: bf16[2,64,16], index: 3, kind: output, shape index: {}]  }
   0x1 LB: > { %s975_s13 = sadd.s32 4294967295, %s1159_s12   ;;  %p979_p0 = scmp.ge.s32.totalorder %s1159_s12, 1  ;;  %s1159_s12 = sphi %s1189_s12, %s13_s12  }
   0x2   : > { %p137_p1 = scmp.lt.s32.totalorder %s1159_s12, 3 }
   0x4   : > { %p138_p2 = pnand %p979_p0, %p137_p1 }
   0x5   : > { %p161_p3 = scmp.lt.s32.totalorder (!%p138_p2), %s975_s13, 1  ;;  %s1162_s24 = smov (!%p138_p2), 16  }
   0x6   : > { %141 = sbr.rel (%p138_p2) target bundleno = 399 (0x18f), region = 32  ;;  %s1163_s25 = smov (!%p138_p2), 48  }
   0x7   : > { %s1164_s30 = smov (!%p138_p2), 64   ;;  %s1165_s10 = smov (!%p138_p2), 32  }
   0x8   : > { %s1166_s15 = smov (!%p138_p2), 80   ;;  %s1167_s16 = smov (!%p138_p2), 96  }
   0x9   : > { %s1168_s17 = smov (!%p138_p2), 112  }
   0xb   : > { %v1140_v0 = vld [vmem:[%s1573_s1 + $0x38] sm:$0xff]   ;;  %s1579_s13 = smov (!%p161_p3, %s975_s13), 1  ;;  %v1161_v1 = vmov 0   ;;  %v1141_v2 = vld [vmem:[%s1573_s1 + $0x30] sm:$0xff]   ;;  %v1142_v5 = vld [vmem:[%s1573_s1 + $0x28] sm:$0xff]   ;;  %vm644_vm3 = vcmask 130048  }
   0xc   : > { %806 = vmatprep.subr.bf16.mxu0 %v1161_v1  ;;  %1085 = vmatprep.subr.bf16.mxu1 %v1161_v1  ;;  %s1103_s18 = smul.u32 288, %s1579_s13  ;;  %vm200_vm0 = vsmask.f32 3328  ;;  %vm201_vm1 = vsmask.f32 7440  ;;  %v1144_v21 = vld [vmem:[%s1573_s1 + $0x20] sm:$0xff]  }
   0xd   : > { %807 = vmatpush1.bf16.msra.mxu0 %v1140_v0  ;;  %1094 = vmatpush1.bf16.msra.mxu1 %v1140_v0  ;;  %v1146_v30 = vld [vmem:[%s1573_s1 + $0x18] sm:$0xff]   ;;  %v1147_v55 = vld [vmem:[%s1573_s1 + $0x10] sm:$0xff]   ;;  %vm1291_vm2 = vmor %vm200_vm0, %vm201_vm1  ;;  %vm657_vm4 = vcmask 261120   ;;  %vm666_vm5 = vcmask 392192   ;;  %vm675_vm6 = vcmask 523264   ;;  %vm684_vm7 = vcmask 654336  }
   0xe   : > { %808 = vmatprep.subr.bf16.mxu0 %v1161_v1  ;;  %1086 = vmatprep.subr.bf16.mxu1 %v1161_v1  ;;  %s1213_s21 = scalar_lea.vmem %s1572_s0, %s1103_s18  ;;  %vm693_vm8 = vcmask 785408   ;;  %vm702_vm9 = vcmask 916480   ;;  %s1076_s20 = sshll.u32 %s1579_s13, 5  ;;  %vm911_vm10 = vcmask 125952  }
   0xf   : > { %v983_v3 = vld [vmem:[%s1213_s21 + $0x48] sm:$0xf]  ;;  %v1217_v4 = vld [vmem:[%s1213_s21 + $0x50] sm:$0xf]  ;;  %v1002_v8 = vld [vmem:[%s1213_s21 + $0xb8] sm:$0xf]  ;;  %s1551_s23 = scalar_lea.vmem %s1575_s3, %s1076_s20 }
  0x10   : > { %v1020_v6 = vcombine.low %v983_v3, %v1217_v4  ;;  %v1000_v7 = vld [vmem:[%s1213_s21 + $0xb0] sm:$0xf]  ;;  %v1226_v9 = vld [vmem:[%s1213_s21 + $0x68] sm:$0xf]  ;;  %v412_v10 = vshrl.u32 %v1002_v8, 16  ;;  %v415_v11 = vshll.u32 %v1002_v8, 16 }
  0x11   : > { %809 = vmatpush1.bf16.msra.mxu0 %v1141_v2  ;;  %1095 = vmatpush1.bf16.msra.mxu1 %v1141_v2  ;;  %v1030_v12 = vcombine.low %v1000_v7, %v1002_v8  ;;  %v398_v13 = vshrl.u32 %v1000_v7, 16  ;;  %v1231_v14 = vld [vmem:[%s1213_s21 + $0x70] sm:$0xf]  ;;  %v401_v15 = vshll.u32 %v1000_v7, 16  ;;  %v1124_v20 = vld [vmem:[%s1213_s21 + $0xf8] ss:$8 sps:$4 sm:$0xff]  }
  0x12   : > { %810 = vmatprep.subr.bf16.mxu0 %v1161_v1  ;;  %1087 = vmatprep.subr.bf16.mxu1 %v1161_v1  ;;  %v1022_v16 = vcombine.low %v1226_v9, %v1231_v14  ;;  %v414_v17 = vrot.slane %v412_v10, 4  ;;  %v417_v18 = vrot.slane %v415_v11, 5  ;;  %v992_v23 = vld [vmem:[%s1213_s21 + $0x90] sm:$0xf]  ;;  %v994_v24 = vld [vmem:[%s1213_s21 + $0x98] sm:$0xf] }
  0x13   : > { %507 = vrot.lane.b32.xlu0 %v1020_v6, %s1162_s24  ;;  %559 = vrot.lane.b32.xlu1 %v1030_v12, %s1163_s25  ;;  %v400_v19 = vrot.slane %v398_v13, 4  ;;  %v403_v22 = vrot.slane %v401_v15, 5  ;;  %v342_v26 = vshrl.u32 %v992_v23, 16  ;;  %v345_v27 = vshll.u32 %v992_v23, 16  ;;  %v1245_v29 = vld [vmem:[%s1213_s21] sm:$0xf] }
  0x14   : > { %v418_v25 = vor.u32 %v417_v18, %v414_v17  ;;  %v356_v28 = vshrl.u32 %v994_v24, 16  ;;  %v359_v32 = vshll.u32 %v994_v24, 16  ;;  %v1028_v33 = vcombine.low %v992_v23, %v994_v24  ;;  %v173_v34 = vld [vmem:[%s1213_s21 + $0x4] sm:$0x1]  ;;  %v1254_v35 = vld [vmem:[%s1213_s21 + $0x8] sm:$0xf] }
  0x15   : > { %811 = vmatpush1.bf16.msra.mxu0 %v1142_v5  ;;  %1096 = vmatpush1.bf16.msra.mxu1 %v1142_v5  ;;  %v404_v31 = vor.u32 %v403_v22, %v400_v19  ;;  %v204_v36 = vshrl.u32 %v1245_v29, 16  ;;  %v344_v38 = vrot.slane %v342_v26, 4  ;;  %v347_v39 = vrot.slane %v345_v27, 5  ;;  %v175_v41 = vld [vmem:[%s1213_s21 + $0xc] sm:$0x1] }
  0x16   : > { %812 = vmatprep.subr.bf16.mxu0 %v1161_v1  ;;  %1088 = vmatprep.subr.bf16.mxu1 %v1161_v1  ;;  %v1257_v37 = vrot.slane %v418_v25, 4  ;;  %v1260_v40 = vrot.slane %v356_v28, 4  ;;  %v361_v43 = vrot.slane %v359_v32, 5  ;;  %v207_v45 = vshll.u32 %v1245_v29, 16  ;;  %v1126_v51 = vld [vmem:[%s1213_s21 + $0xd8] ss:$8 sps:$4 sm:$0xff]  }
  0x17   : > { %511 = vrot.lane.b32.xlu0 %v1022_v16, %s1162_s24  ;;  %587 = vrot.lane.b32.xlu1 %v1124_v20, %s1164_s30  ;;  %v1263_v42 = vrot.slane %v404_v31, 4  ;;  %v206_v44 = vrot.slane %v204_v36, 4  ;;  %v213_v46 = vshll.u32 %v173_v34, 16  ;;  %v218_v47 = vshrl.u32 %v1254_v35, 16  ;;  %v1273_v52 = vld [vmem:[%s1213_s21 + $0x20] sm:$0xf] }
  0x18   : > { %v221_v48 = vshll.u32 %v1254_v35, 16  ;;  %v227_v49 = vshll.u32 %v175_v41, 16  ;;  %v209_v50 = vrot.slane %v207_v45, 5  ;;  %v348_v53 = vor.u32 %v347_v39, %v344_v38  ;;  %v181_v60 = vld [vmem:[%s1213_s21 + $0x24] sm:$0x1]  ;;  %v1148_v12 = vld [vmem:[%s1573_s1 + $0x8] sm:$0xff]  }
  0x19   : > { %813 = vmatpush1.bf16.msra.mxu0 %v1144_v21  ;;  %1097 = vmatpush1.bf16.msra.mxu1 %v1144_v21  ;;  %v1016_v54 = vcombine.low %v1245_v29, %v1254_v35  ;;  %v215_v56 = vrot.slane %v213_v46, 5  ;;  %v220_v57 = vrot.slane %v218_v47, 4  ;;  %v1282_v62 = vld [vmem:[%s1213_s21 + $0x28] sm:$0xf]  ;;  %v183_v63 = vld [vmem:[%s1213_s21 + $0x2c] sm:$0x1]  ;;  %v362_v3 = vor.u32 %v361_v43, %v1260_v40 }
  0x1a   : > { %814 = vmatprep.subr.bf16.mxu0 %v1161_v1  ;;  %1089 = vmatprep.subr.bf16.mxu1 %v1161_v1  ;;  %v223_v58 = vrot.slane %v221_v48, 5  ;;  %v229_v59 = vrot.slane %v227_v49, 5  ;;  %v210_v61 = vor.u32 %v209_v50, %v206_v44  ;;  %v260_v0 = vshrl.u32 %v1273_v52, 16  ;;  %v993_v11 = vld [vmem:[%s1213_s21 + $0x94] sm:$0x1]  ;;  %v1149_v47 = vld [vmem:[%s1573_s1] sm:$0xff]  }
  0x1b   : > { %555 = vrot.lane.b32.xlu0 %v1028_v33, %s1163_s25  ;;  %v263_v2 = vshll.u32 %v1273_v52, 16  ;;  %v269_v7 = vshll.u32 %v181_v60, 16  ;;  %v274_v8 = vshrl.u32 %v1282_v62, 16  ;;  %v277_v10 = vshll.u32 %v1282_v62, 16  ;;  %v995_v18 = vld [vmem:[%s1213_s21 + $0x9c] sm:$0x1] }
  0x1c   : > { %v224_v6 = vor.u32 %v223_v58, %v220_v57  ;;  %v211_v13 = vrot.slane %v210_v61, 4  ;;  %v262_v15 = vrot.slane %v260_v0, 4  ;;  %v283_v17 = vshll.u32 %v183_v63, 16  ;;  %v1001_v23 = vld [vmem:[%s1213_s21 + $0xb4] sm:$0x1] }
  0x1d   : > { %815 = vmatpush1.bf16.msra.mxu0 %v1146_v30  ;;  %1098 = vmatpush1.bf16.msra.mxu1 %v1146_v30  ;;  %v265_v16 = vrot.slane %v263_v2, 5  ;;  %v271_v20 = vrot.slane %v269_v7, 5  ;;  %v276_v21 = vrot.slane %v274_v8, 4  ;;  %v279_v22 = vrot.slane %v277_v10, 5  ;;  %v1306_v24 = vld [vmem:[%s1213_s21 + $0x58] sm:$0xf] }
  0x1e   : > { %816 = vmatprep.subr.bf16.mxu0 %v1161_v1  ;;  %1090 = vmatprep.subr.bf16.mxu1 %v1161_v1  ;;  %v225_v19 = vrot.slane %v224_v6, 4  ;;  %v216_v25 = vsel %vm1291_vm2, %v211_v13, %v215_v56  ;;  %v285_v27 = vrot.slane %v283_v17, 5  ;;  %v349_v28 = vrot.slane %v348_v53, 4  ;;  %v1003_v30 = vld [vmem:[%s1213_s21 + $0xbc] sm:$0x1] }
  0x1f   : > { %583 = vrot.lane.b32.xlu0 %v1126_v51, %s1164_s30  ;;  %v266_v26 = vor.u32 %v265_v16, %v262_v15  ;;  %v280_v32 = vor.u32 %v279_v22, %v276_v21  ;;  %v351_v33 = vshll.u32 %v993_v11, 16  ;;  %v363_v34 = vrot.slane %v362_v3, 4  ;;  %v1321_v46 = vld [vmem:[%s1213_s21 + $0x10] sm:$0xf]  ;;  %v1346_v60 = vld [vmem:[%s1213_s21 + $0x60] sm:$0xf] }
  0x20   : > { %v1314_v31 = vsel %vm1291_vm2, %v225_v19, %v229_v59  ;;  %v365_v39 = vshll.u32 %v995_v18, 16  ;;  %v407_v40 = vshll.u32 %v1001_v23, 16  ;;  %v1044_v41 = vcombine.low %v1217_v4, %v1306_v24  ;;  %v1333_v53 = vld [vmem:[%s1213_s21 + $0x30] sm:$0xf]  ;;  %v1343_v59 = vld [vmem:[%s1213_s21 + $0x78] sm:$0xf] }
  0x21   : > { %817 = vmatpush1.bf16.msra.mxu0 %v1147_v55  ;;  %1099 = vmatpush1.bf16.msra.mxu1 %v1147_v55  ;;  %v1024_v36 = vcombine.low %v216_v25, %v1314_v31  ;;  %v267_v38 = vrot.slane %v266_v26, 4  ;;  %v281_v43 = vrot.slane %v280_v32, 4  ;;  %v353_v44 = vrot.slane %v351_v33, 5  ;;  %v177_v3 = vld [vmem:[%s1213_s21 + $0x14] sm:$0x1] }
  0x22   : > { %818 = vmatprep.subr.bf16.mxu0 %v1161_v1  ;;  %1091 = vmatprep.subr.bf16.mxu1 %v1161_v1  ;;  %v421_v45 = vshll.u32 %v1003_v30, 16  ;;  %v367_v49 = vrot.slane %v365_v39, 5  ;;  %v409_v50 = vrot.slane %v407_v40, 5  ;;  %v232_v51 = vshrl.u32 %v1321_v46, 16  ;;  %v1360_v6 = vld [vmem:[%s1213_s21 + $0x18] sm:$0xf] }
  0x23   : > { %527 = vrot.lane.b32.xlu1 %v1024_v36, %s1165_s10  ;;  %v1329_v48 = vsel %vm1291_vm2, %v267_v38, %v271_v20  ;;  %v1337_v55 = vsel %vm1291_vm2, %v281_v43, %v285_v27  ;;  %v354_v56 = vsel %vm1291_vm2, %v349_v28, %v353_v44  ;;  %v235_v58 = vshll.u32 %v1321_v46, 16  ;;  %v185_v17 = vld [vmem:[%s1213_s21 + $0x34] sm:$0x1]  ;;  %v1383_v22 = vld [vmem:[%s1213_s21 + $0x38] sm:$0xf] }
  0x24   : > { %v423_v57 = vrot.slane %v421_v45, 5  ;;  %v1026_v61 = vcombine.low %v1329_v48, %v1337_v55  ;;  %v368_v63 = vsel %vm1291_vm2, %v363_v34, %v367_v49  ;;  %v410_v0 = vsel %vm1291_vm2, %v1263_v42, %v409_v50  ;;  %v1150_v42 = vld [vmem:[%s1573_s1 + $0x40] sm:$0xff]   ;;  %v187_v27 = vld [vmem:[%s1213_s21 + $0x3c] sm:$0x1] }
  0x25   : > { %819 = vmatpush1.bf16.msra.mxu0 %v1148_v12  ;;  %1100 = vmatpush1.bf16.msra.mxu1 %v1148_v12  ;;  %v288_v2 = vshrl.u32 %v1333_v53, 16  ;;  %v1036_v7 = vcombine.low %v354_v56, %v368_v63  ;;  %v1040_v10 = vcombine.low %v1254_v35, %v1321_v46  ;;  %v291_v11 = vshll.u32 %v1333_v53, 16  ;;  %v179_v12 = vld [vmem:[%s1213_s21 + $0x1c] sm:$0x1]  ;;  %v1386_v23 = vld [vmem:[%s1213_s21 + $0x80] sm:$0xf] }
  0x26   : > { %820 = vmatprep.subr.bf16.mxu0 %v1161_v1  ;;  %1092 = vmatprep.subr.bf16.mxu1 %v1161_v1  ;;  %v424_v8 = vsel %vm1291_vm2, %v1257_v37, %v423_v57  ;;  %v1042_v37 = vcombine.low %v1282_v62, %v1333_v53  ;;  %v1046_v15 = vcombine.low %v1231_v14, %v1343_v59  ;;  %v234_v18 = vrot.slane %v232_v51, 4  ;;  %v1393_v36 = vld [vmem:[%s1213_s21 + $0x40] sm:$0xf]  ;;  %v189_v38 = vld [vmem:[%s1213_s21 + $0x44] sm:$0x1] }
  0x27   : > { %531 = vrot.lane.b32.xlu1 %v1026_v61, %s1165_s10  ;;  %v1038_v13 = vcombine.low %v410_v0, %v424_v8  ;;  %v1021_v16 = vcombine.low %v1306_v24, %v1346_v60  ;;  %603 = vrot.lane.b32.xlu0 %v1036_v7, %s1166_s15  ;;  %v237_v19 = vrot.slane %v235_v58, 5  ;;  %v241_v20 = vshll.u32 %v177_v3, 16  ;;  %v1401_v51 = vld [vmem:[%s1213_s21 + $0xa0] sm:$0xf]  ;;  %v1412_v7 = vld [vmem:[%s1213_s21 + $0xa8] sm:$0xf] }
  0x28   : > { %v246_v21 = vshrl.u32 %v1360_v6, 16  ;;  %v249_v25 = vshll.u32 %v1360_v6, 16  ;;  %v255_v26 = vshll.u32 %v179_v12, 16  ;;  %v290_v28 = vrot.slane %v288_v2, 4 }
  0x29   : > { %821 = vmatpush1.bf16.msra.mxu0 %v1149_v47  ;;  %1101 = vmatpush1.bf16.msra.mxu1 %v1149_v47  ;;  %v293_v30 = vrot.slane %v291_v11, 5  ;;  %v238_v32 = vor.u32 %v237_v19, %v234_v18  ;;  %v243_v33 = vrot.slane %v241_v20, 5  ;;  %v297_v39 = vshll.u32 %v185_v17, 16 }
  0x2a   : > { %836 = vmatprep.subr.bf16.mxu0 %v1161_v1  ;;  %1093 = vmatprep.subr.bf16.mxu1 %v1161_v1  ;;  %v248_v34 = vrot.slane %v246_v21, 4  ;;  %v251_v40 = vrot.slane %v249_v25, 5  ;;  %v257_v43 = vrot.slane %v255_v26, 5  ;;  %v302_v45 = vshrl.u32 %v1383_v22, 16 }
  0x2b   : > { %607 = vrot.lane.b32.xlu1 %v1038_v13, %s1166_s15  ;;  %v294_v44 = vor.u32 %v293_v30, %v290_v28  ;;  %617 = vrot.lane.b32.xlu0 %v1040_v10, %s1167_s16  ;;  %v239_v1 = vrot.slane %v238_v32, 4  ;;  %v299_v47 = vrot.slane %v297_v39, 5  ;;  %v305_v49 = vshll.u32 %v1383_v22, 16  ;;  %v1006_v28 = vld [vmem:[%s1213_s21 + $0xc8] sm:$0xf] }
  0x2c   : > { %v311_v50 = vshll.u32 %v187_v27, 16  ;;  %v252_v56 = vor.u32 %v251_v40, %v248_v34  ;;  %v304_v58 = vrot.slane %v302_v45, 4  ;;  %v454_v61 = vshrl.u32 %v1393_v36, 16  ;;  %v999_v39 = vld [vmem:[%s1213_s21 + $0xac] sm:$0x1] }
  0x2d   : > { %837 = vmatpush2.bf16.msra.mxu0 %v1150_v42  ;;  %1102 = vmatpush2.bf16.msra.mxu1 %v1150_v42  ;;  %v295_v57 = vrot.slane %v294_v44, 4  ;;  %v1023_v63 = vcombine.low %v1343_v59, %v1386_v23  ;;  %v1408_v0 = vsel %vm1291_vm2, %v239_v1, %v243_v33  ;;  %v307_v2 = vrot.slane %v305_v49, 5  ;;  %v1005_v59 = vld [vmem:[%s1213_s21 + $0xc4] sm:$0x1] }
  0x2e   : > { %v457_v3 = vshll.u32 %v1393_v36, 16  ;;  %v253_v8 = vrot.slane %v252_v56, 4  ;;  %v313_v10 = vrot.slane %v311_v50, 5  ;;  %v456_v11 = vrot.slane %v454_v61, 4 }
  0x2f   : > { %621 = vrot.lane.b32.xlu1 %v1042_v37, %s1167_s16  ;;  %v463_v12 = vshll.u32 %v189_v38, 16  ;;  %631 = vrot.lane.b32.xlu0 %v1044_v41, %s1168_s17  ;;  %v308_v42 = vor.u32 %v307_v2, %v304_v58  ;;  %v370_v17 = vshrl.u32 %v1401_v51, 16  ;;  %v373_v18 = vshll.u32 %v1401_v51, 16  ;;  %v1004_v41 = vld [vmem:[%s1213_s21 + $0xc0] sm:$0xf] }
  0x30   : > { %v459_v13 = vrot.slane %v457_v3, 5  ;;  %v1423_v37 = vsel %vm1291_vm2, %v253_v8, %v257_v43  ;;  %v1427_v19 = vsel %vm1291_vm2, %v295_v57, %v299_v47  ;;  %v384_v20 = vshrl.u32 %v1412_v7, 16  ;;  %v997_v38 = vld [vmem:[%s1213_s21 + $0xa4] sm:$0x1] }
  0x31   : > { %v387_v4 = vshll.u32 %v1412_v7, 16  ;;  %v1049_v21 = vcombine.low %v1423_v37, %v1329_v48  ;;  %v309_v25 = vrot.slane %v308_v42, 4  ;;  %v465_v27 = vrot.slane %v463_v12, 5 }
  0x32   : > { %v460_v26 = vor.u32 %v459_v13, %v456_v11  ;;  %v372_v30 = vrot.slane %v370_v17, 4  ;;  %v375_v32 = vrot.slane %v373_v18, 5  ;;  %v386_v33 = vrot.slane %v384_v20, 4 }
  0x33   : > { %635 = vrot.lane.b32.xlu1 %v1046_v15, %s1168_s17  ;;  %v389_v34 = vrot.slane %v387_v4, 5  ;;  %509 = vrot.lane.b32.xlu0 %v1021_v16, %s1162_s24  ;;  %v1025_v40 = vcombine.low %v1408_v0, %v1423_v37  ;;  %v314_v43 = vsel %vm1291_vm2, %v309_v25, %v313_v10  ;;  %v426_v14 = vshrl.u32 %v1004_v41, 16  ;;  %v1007_v15 = vld [vmem:[%s1213_s21 + $0xcc] sm:$0x1]  ;;  %v1134_v25 = vld [vmem:[%s1213_s21 + $0xe8] ss:$8 sps:$4 sm:$0xff]  }
  0x34   : > { %v461_v44 = vrot.slane %v460_v26, 4  ;;  %v1029_v45 = vcombine.low %v1401_v51, %v1412_v7  ;;  %v429_v1 = vshll.u32 %v1004_v41, 16  ;;  %v440_v47 = vshrl.u32 %v1006_v28, 16 }
  0x35   : > { %v443_v49 = vshll.u32 %v1006_v28, 16  ;;  %v1027_v16 = vcombine.low %v1427_v19, %v314_v43  ;;  %v428_v50 = vrot.slane %v426_v14, 4  ;;  %v376_v56 = vor.u32 %v375_v32, %v372_v30 }
  0x36   : > { %v466_v24 = vsel %vm1291_vm2, %v461_v44, %v465_v27  ;;  %v431_v58 = vrot.slane %v429_v1, 5  ;;  %v442_v61 = vrot.slane %v440_v47, 4  ;;  %v379_v3 = vshll.u32 %v997_v38, 16 }
  0x37   : > { %513 = vrot.lane.b32.xlu1 %v1023_v63, %s1162_s24  ;;  %v1457_v57 = vcombine.low %v314_v43, %v466_v24  ;;  %v445_v2 = vrot.slane %v443_v49, 5  ;;  %529 = vrot.lane.b32.xlu0 %v1025_v40, %s1165_s10  ;;  %v377_v51 = vrot.slane %v376_v56, 4  ;;  %v390_v7 = vor.u32 %v389_v34, %v386_v33  ;;  %v1135_v34 = vld [vmem:[%s1213_s21 + $0x108] ss:$8 sps:$4 sm:$0xff]  }
  0x38   : > { %v393_v8 = vshll.u32 %v999_v39, 16  ;;  %v432_v10 = vor.u32 %v431_v58, %v428_v50  ;;  %v435_v11 = vshll.u32 %v1005_v59, 16  ;;  %v449_v42 = vshll.u32 %v1007_v15, 16 }
  0x39   : > { %v446_v12 = vor.u32 %v445_v2, %v442_v61  ;;  %v381_v13 = vrot.slane %v379_v3, 5  ;;  %v391_v17 = vrot.slane %v390_v7, 4  ;;  %v1031_v18 = vcombine.low %v1004_v41, %v1006_v28 }
  0x3a   : > { %v395_v63 = vrot.slane %v393_v8, 5  ;;  %v433_v20 = vrot.slane %v432_v10, 4  ;;  %v437_v4 = vrot.slane %v435_v11, 5  ;;  %v451_v32 = vrot.slane %v449_v42, 5 }
  0x3b   : > { %533 = vrot.lane.b32.xlu1 %v1027_v16, %s1165_s10  ;;  %557 = vrot.lane.b32.xlu0 %v1029_v45, %s1163_s25  ;;  %v382_v26 = vsel %vm1291_vm2, %v377_v51, %v381_v13  ;;  %v447_v30 = vrot.slane %v446_v12, 4  ;;  %v1018_v33 = vcombine.low %v1273_v52, %v1282_v62  ;;  %v1048_v38 = vcombine.low %v1314_v31, %v1408_v0 }
  0x3c   : > { %v396_v27 = vsel %vm1291_vm2, %v391_v17, %v395_v63  ;;  %v438_v28 = vsel %vm1291_vm2, %v433_v20, %v437_v4  ;;  %v1050_v62 = vcombine.low %v1337_v55, %v1427_v19  ;;  %v1017_v40 = vcombine.low %v1321_v46, %v1360_v6  ;;  %v991_v19 = vld [vmem:[%s1213_s21 + $0x88] sm:$0xf] }
  0x3d   : > { %v1037_v41 = vcombine.low %v382_v26, %v396_v27  ;;  %v452_v39 = vsel %vm1291_vm2, %v447_v30, %v451_v32  ;;  %v1019_v43 = vcombine.low %v1333_v53, %v1383_v22  ;;  %1062 = vmatprep.mubr.msk.bf16.mxu0 %vm644_vm3, %v1048_v38  ;;  %v1041_v5 = vcombine.low %v1360_v6, %v1273_v52 }
  0x3e   : > { %1064 = vmatprep.mubr.msk.bf16.mxu1 %vm644_vm3, %v1050_v62  ;;  %v1039_v31 = vcombine.low %v438_v28, %v452_v39  ;;  %v1043_v55 = vcombine.low %v1383_v22, %v1393_v36  ;;  %v1045_v0 = vcombine.low %v1346_v60, %v1226_v9  ;;  %v1047_v44 = vcombine.low %v1386_v23, %v991_v19 }
  0x3f   : > { %561 = vrot.lane.b32.xlu1 %v1031_v18, %s1163_s25  ;;  %585 = vrot.lane.b32.xlu0 %v1134_v25, %s1164_s30 }
  0x43   : > { %589 = vrot.lane.b32.xlu1 %v1135_v34, %s1164_s30  ;;  %605 = vrot.lane.b32.xlu0 %v1037_v41, %s1166_s15 }
  0x47   : > { %609 = vrot.lane.b32.xlu1 %v1039_v31, %s1166_s15  ;;  %619 = vrot.lane.b32.xlu0 %v1041_v5, %s1167_s16 }
  0x4b   : > { %623 = vrot.lane.b32.xlu1 %v1043_v55, %s1167_s16  ;;  %633 = vrot.lane.b32.xlu0 %v1045_v0, %s1168_s17 }
  0x4f   : > { %637 = vrot.lane.b32.xlu1 %v1047_v44, %s1168_s17 }
  0x85   : > { %v508_v52 = vpop.permute.xlu0 %507  ;;  %v560_v59 = vpop.permute.xlu1 %559 }
  0x86   : > { %v647_v9 = vsel %vm644_vm3, %v1016_v54, %v508_v52 }
  0x89   : > { %v512_v14 = vpop.permute.xlu0 %511  ;;  %v588_v45 = vpop.permute.xlu1 %587 }
  0x8a   : > { %v653_v23 = vsel %vm644_vm3, %v1018_v33, %v512_v14 }
  0x8d   : > { %v556_v15 = vpop.permute.xlu0 %555 }
  0x91   : > { %v584_v36 = vpop.permute.xlu0 %583 }
  0x95   : > { %v528_v1 = vpop.permute.xlu1 %527 }
  0x96   : > { %v659_v47 = vsel %vm657_vm4, %v647_v9, %v528_v1 }
  0x97   : > { %v668_v16 = vsel %vm666_vm5, %v659_v47, %v556_v15 }
  0x98   : > { %v677_v29 = vsel %vm675_vm6, %v668_v16, %v584_v36 }
  0x99   : > { %v532_v60 = vpop.permute.xlu1 %531  ;;  %v604_v49 = vpop.permute.xlu0 %603 }
  0x9a   : > { %v663_v24 = vsel %vm657_vm4, %v653_v23, %v532_v60  ;;  %v686_v35 = vsel %vm684_vm7, %v677_v29, %v604_v49 }
  0x9b   : > { %v672_v56 = vsel %vm666_vm5, %v663_v24, %v560_v59 }
  0x9c   : > { %v681_v54 = vsel %vm675_vm6, %v672_v56, %v588_v45 }
  0x9d   : > { %v608_v50 = vpop.permute.xlu1 %607  ;;  %v618_v58 = vpop.permute.xlu0 %617 }
  0x9e   : > { %v695_v2 = vsel %vm693_vm8, %v686_v35, %v618_v58  ;;  %v690_v7 = vsel %vm684_vm7, %v681_v54, %v608_v50 }
  0xa1   : > { %v622_v61 = vpop.permute.xlu1 %621  ;;  %v632_v51 = vpop.permute.xlu0 %631 }
  0xa2   : > { %v704_v3 = vsel %vm702_vm9, %v695_v2, %v632_v51  ;;  %v699_v8 = vsel %vm693_vm8, %v690_v7, %v622_v61 }
  0xa3   : > { %839 = vmatmul.mubr.bf16.vlgmr.msra.gmra.mxu0 %v704_v3 }
  0xa4   : > { %1063 = vmatprep.mubr.msk.bf16.mxu0 %vm644_vm3, %v1049_v21 }
  0xa5   : > { %v636_v10 = vpop.permute.xlu1 %635  ;;  %v510_v12 = vpop.permute.xlu0 %509 }
  0xa6   : > { %v710_v11 = vsel %vm702_vm9, %v699_v8, %v636_v10  ;;  %v650_v48 = vsel %vm644_vm3, %v1017_v40, %v510_v12  ;;  %v1052_v40 = vld [vmem:[%s1574_s2] ss:$0 sm:$0xff] }
  0xa7   : > { %855 = vmatmul.mubr.bf16.vlgmr.msra.gmra.mxu1 %v710_v11 }
  0xa8   : > { %1065 = vmatprep.mubr.msk.bf16.mxu1 %vm644_vm3, %v1457_v57 }
  0xa9   : > { %v514_v42 = vpop.permute.xlu1 %513  ;;  %v530_v13 = vpop.permute.xlu0 %529 }
  0xaa   : > { %v661_v21 = vsel %vm657_vm4, %v650_v48, %v530_v13  ;;  %v656_v57 = vsel %vm644_vm3, %v1019_v43, %v514_v42 }
  0xad   : > { %v534_v17 = vpop.permute.xlu1 %533  ;;  %v558_v63 = vpop.permute.xlu0 %557 }
  0xae   : > { %v670_v27 = vsel %vm666_vm5, %v661_v21, %v558_v63  ;;  %v665_v32 = vsel %vm657_vm4, %v656_v57, %v534_v17 }
  0xb1   : > { %v562_v18 = vpop.permute.xlu1 %561  ;;  %v586_v20 = vpop.permute.xlu0 %585 }
  0xb2   : > { %v679_v30 = vsel %vm675_vm6, %v670_v27, %v586_v20  ;;  %v674_v33 = vsel %vm666_vm5, %v665_v32, %v562_v18 }
  0xb5   : > { %v590_v4 = vpop.permute.xlu1 %589  ;;  %v606_v25 = vpop.permute.xlu0 %605 }
  0xb6   : > { %v688_v46 = vsel %vm684_vm7, %v679_v30, %v606_v25  ;;  %v683_v28 = vsel %vm675_vm6, %v674_v33, %v590_v4 }
  0xb9   : > { %v610_v37 = vpop.permute.xlu1 %609  ;;  %v620_v26 = vpop.permute.xlu0 %619 }
  0xba   : > { %v697_v34 = vsel %vm693_vm8, %v688_v46, %v620_v26  ;;  %v692_v53 = vsel %vm684_vm7, %v683_v28, %v610_v37 }
  0xbd   : > { %v624_v6 = vpop.permute.xlu1 %623  ;;  %v634_v41 = vpop.permute.xlu0 %633 }
  0xbe   : > { %v707_v38 = vsel %vm702_vm9, %v697_v34, %v634_v41  ;;  %v701_v22 = vsel %vm693_vm8, %v692_v53, %v624_v6 }
  0xbf   : > { %847 = vmatmul.mubr.bf16.gmra.mxu0 %v707_v38 }
  0xc1   : > { %v638_v39 = vpop.permute.xlu1 %637 }
  0xc2   : > { %v713_v62 = vsel %vm702_vm9, %v701_v22, %v638_v39 }
  0xc3   : > { %863 = vmatmul.mubr.bf16.gmra.mxu1 %v713_v62 }
 0x163   : > { %v840_v43 = vpop.f32.mrf.mxu0 }
 0x164   : > { %v841_v31 = vadd.f32 %v1052_v40, %v840_v43 }
 0x165   : > { %v842_v5 = vpop.f32.mrf.mxu0 }
 0x166   : > { %v871_v55 = vmax.f32 %v841_v31, 0.0 }
 0x167   : > { %v856_v0 = vpop.f32.mrf.mxu1  ;;  %v843_v44 = vpop.f32.mrf.mxu0 }
 0x168   : > { %v857_v19 = vadd.f32 %v1052_v40, %v856_v0  ;;  %v1077_v52 = vpack.c.bf16 %v871_v55, %v871_v55  ;;  %v844_v59 = vadd.f32 %v1052_v40, %v843_v44 }
 0x169   : > { %v858_v14 = vpop.f32.mrf.mxu1  ;;  %v845_v45 = vpop.f32.mrf.mxu0 }
 0x16a   : > { %v875_v15 = vmax.f32 %v857_v19, 0.0  ;;  %912 = vst.msk [vmem:[%s1551_s23] sm:$0xf] %vm911_vm10, %v1077_v52  ;;  %v872_v36 = vmax.f32 %v844_v59, 0.0 }
 0x16b   : > { %v859_v1 = vpop.f32.mrf.mxu1 }
 0x16c   : > { %v1081_v9 = vpack.c.bf16 %v875_v15, %v875_v15  ;;  %v860_v60 = vadd.f32 %v1052_v40, %v859_v1  ;;  %v1078_v23 = vpack.c.bf16 %v872_v36, %v872_v36 }
 0x16d   : > { %v861_v47 = vpop.f32.mrf.mxu1 }
 0x16e   : > { %916 = vst.msk [vmem:[%s1551_s23 + $0x10] sm:$0xf] %vm911_vm10, %v1081_v9  ;;  %v876_v49 = vmax.f32 %v860_v60, 0.0  ;;  %913 = vst.msk [vmem:[%s1551_s23 + $0x4] sm:$0xf] %vm911_vm10, %v1078_v23 }
 0x170   : > { %v1082_v24 = vpack.c.bf16 %v876_v49, %v876_v49 }
 0x172   : > { %917 = vst.msk [vmem:[%s1551_s23 + $0x14] sm:$0xf] %vm911_vm10, %v1082_v24 }
 0x17f   : > { %v848_v16 = vpop.f32.mrf.mxu0 }
 0x180   : > { %v849_v50 = vadd.f32 %v1052_v40, %v848_v16 }
 0x181   : > { %v850_v56 = vpop.f32.mrf.mxu0 }
 0x182   : > { %v873_v58 = vmax.f32 %v849_v50, 0.0 }
 0x183   : > { %v864_v29 = vpop.f32.mrf.mxu1  ;;  %v851_v54 = vpop.f32.mrf.mxu0 }
 0x184   : > { %v865_v35 = vadd.f32 %v1052_v40, %v864_v29  ;;  %v1079_v61 = vpack.c.bf16 %v873_v58, %v873_v58  ;;  %v852_v51 = vadd.f32 %v1052_v40, %v851_v54 }
 0x185   : > { %v866_v2 = vpop.f32.mrf.mxu1  ;;  %v853_v7 = vpop.f32.mrf.mxu0 }
 0x186   : > { %v877_v3 = vmax.f32 %v865_v35, 0.0  ;;  %914 = vst.msk [vmem:[%s1551_s23 + $0x8] sm:$0xf] %vm911_vm10, %v1079_v61  ;;  %v874_v8 = vmax.f32 %v852_v51, 0.0 }
 0x187   : > { %v867_v10 = vpop.f32.mrf.mxu1 }
 0x188   : > { %v1083_v11 = vpack.c.bf16 %v877_v3, %v877_v3  ;;  %v868_v12 = vadd.f32 %v1052_v40, %v867_v10  ;;  %v1080_v42 = vpack.c.bf16 %v874_v8, %v874_v8 }
 0x189   : > { %v869_v13 = vpop.f32.mrf.mxu1 }
 0x18a   : > { %918 = vst.msk [vmem:[%s1551_s23 + $0x18] sm:$0xf] %vm911_vm10, %v1083_v11  ;;  %v878_v17 = vmax.f32 %v868_v12, 0.0  ;;  %915 = vst.msk [vmem:[%s1551_s23 + $0xc] sm:$0xf] %vm911_vm10, %v1080_v42 }
 0x18c   : > { %v1084_v63 = vpack.c.bf16 %v878_v17, %v878_v17 }
 0x18e   : > { %919 = vst.msk [vmem:[%s1551_s23 + $0x1c] sm:$0xf] %vm911_vm10, %v1084_v63 }
 0x18f PF: > { %s13_s12 = sadd.s32 1, %s1159_s12  }
 0x190   : > { %p10_p4 = scmp.ge.s32.totalorder %s13_s12, 4  }
 0x192   :  { %12 = sbr.rel (!%p10_p4) target bundleno = 1 (0x1), region = 65 }

// kernel: fwd.9
= control target key start
LH: loop header
LB: loop body
LE: loop exit
PB: predicated region body
PF: predicated region fallthrough
CT: control target
= control target key end

     0   :  { %s672_s12 = smov 0   ;;  %s674_s13 = smov 0   ;;  %s749_s0 = inlined_call_operand.vmem [shape: bf16[128,64], index: 0, kind: input, shape index: {}]   ;;  %s750_s1 = inlined_call_operand.vmem [shape: bf16[64,16], index: 1, kind: input, shape index: {}]   ;;  %s751_s2 = inlined_call_operand.vmem [shape: f32[1,16], index: 2, kind: input, shape index: {}]   ;;  %s752_s3 = inlined_call_operand.vmem [shape: bf16[128,16], index: 3, kind: output, shape index: {}]  }
   0x1   :  { %s676_s14 = smov 0  }
   0x2 LB: > { %s25_s15 = sadd.s32 1, %s646_s13  ;;  %p528_p0 = scmp.ge.s32.totalorder %s650_s14, 1  ;;  %s650_s14 = sphi %s676_s14, %s13_s14   ;;  %s646_s13 = sphi %s674_s13, %s754_s13   ;;  %s642_s12 = sphi %s672_s12, %s753_s12  }
   0x3   : > { %p27_p1 = scmp.ge.s32.totalorder %s25_s15, 2  ;;  %p169_p2 = scmp.lt.s32.totalorder %s650_s14, 3 }
   0x5   : > { %s756_s15 = smov (%p27_p1, %s25_s15), 0  ;;  %p170_p3 = pnand %p528_p0, %p169_p2 }
   0x6   : > { %s529_s18 = sshll.u32 (!%p170_p3), %s642_s12, 3 }
   0x7   : > { %173 = sbr.rel (%p170_p3) target bundleno = 236 (0xec), region = 32  ;;  %p204_p4 = scmp.lt.s32.totalorder (!%p170_p3), %s529_s18, 15 }
   0xc   : > { %v620_v0 = vld [vmem:[%s750_s1 + $0x18] sm:$0xff]   ;;  %v621_v1 = vld [vmem:[%s750_s1 + $0x10] sm:$0xff]   ;;  %s758_s18 = smov (!%p204_p4, %s529_s18), 15  ;;  %v622_v2 = vld [vmem:[%s750_s1 + $0x8] sm:$0xff]   ;;  %vm293_vm0 = vcmask 523264   ;;  %vm411_vm1 = vcmask 125952  }
   0xd   : > { %572 = vmatprep.subr.bf16.mxu0 %v620_v0  ;;  %588 = vmatprep.subr.bf16.mxu1 %v620_v0  ;;  %s530_s23 = sshll.u32 %s758_s18, 2  ;;  %v623_v3 = vld [vmem:[%s750_s1] sm:$0xff]  }
   0xe   : > { %573 = vmatpush3.bf16.msra.mxu0 %v620_v0  ;;  %592 = vmatpush3.bf16.msra.mxu1 %v620_v0  ;;  %s207_s28 = scalar_lea.vmem %s749_s0, %s530_s23  ;;  %v533_v8 = vld [vmem:[%s751_s2] ss:$0 sm:$0xff]  ;;  %s722_s6 = scalar_lea.vmem %s752_s3, %s530_s23 }
   0xf   : > { %574 = vmatprep.subr.bf16.mxu0 %v621_v1  ;;  %589 = vmatprep.subr.bf16.mxu1 %v621_v1  ;;  %v624_v4 = vld [vmem:[%s207_s28] sm:$0xff]   ;;  %v625_v5 = vld [vmem:[%s207_s28 + $0x10] sm:$0xff]   ;;  %v626_v6 = vld [vmem:[%s207_s28 + $0x8] sm:$0xff]  }
  0x10   : > { %580 = vmatprep.mubr.msk.bf16.mxu0 %vm293_vm0, %v624_v4  ;;  %584 = vmatprep.mubr.msk.bf16.mxu1 %vm293_vm0, %v625_v5  ;;  %v627_v7 = vld [vmem:[%s207_s28 + $0x18] sm:$0xff]  }
  0x12   : > { %575 = vmatpush3.bf16.msra.mxu0 %v621_v1  ;;  %593 = vmatpush3.bf16.msra.mxu1 %v621_v1 }
  0x13   : > { %576 = vmatprep.subr.bf16.mxu0 %v622_v2  ;;  %590 = vmatprep.subr.bf16.mxu1 %v622_v2 }
  0x16   : > { %577 = vmatpush3.bf16.msra.mxu0 %v622_v2  ;;  %594 = vmatpush3.bf16.msra.mxu1 %v622_v2 }
  0x17   : > { %578 = vmatprep.subr.bf16.mxu0 %v623_v3  ;;  %591 = vmatprep.subr.bf16.mxu1 %v623_v3 }
  0x1a   : > { %579 = vmatpush3.bf16.msra.mxu0 %v623_v3  ;;  %595 = vmatpush3.bf16.msra.mxu1 %v623_v3 }
  0x1d   : > { %581 = vmatmul.mubr.msk.bf16.vlgmr.msra.gmra.mxu0 %vm293_vm0, %v626_v6  ;;  %585 = vmatmul.mubr.msk.bf16.vlgmr.msra.gmra.mxu1 %vm293_vm0, %v627_v7 }
  0xdd   : > { %v582_v9 = vpop.f32.mrf.mxu0  ;;  %v586_v10 = vpop.f32.mrf.mxu1 }
  0xde   : > { %v349_v11 = vadd.f32 %v582_v9, %v533_v8  ;;  %v365_v12 = vadd.f32 %v586_v10, %v533_v8 }
  0xdf   : > { %v340_v13 = vpop.f32.mrf.mxu0  ;;  %v356_v14 = vpop.f32.mrf.mxu1 }
  0xe0   : > { %v373_v15 = vmax.f32 %v349_v11, 0.0  ;;  %v377_v16 = vmax.f32 %v365_v12, 0.0  ;;  %v341_v17 = vadd.f32 %v533_v8, %v340_v13  ;;  %v357_v18 = vadd.f32 %v533_v8, %v356_v14 }
  0xe1   : > { %v583_v19 = vpop.f32.mrf.mxu0  ;;  %v587_v20 = vpop.f32.mrf.mxu1 }
  0xe2   : > { %v558_v21 = vpack.c.bf16 %v373_v15, %v373_v15  ;;  %v562_v22 = vpack.c.bf16 %v377_v16, %v377_v16  ;;  %v371_v23 = vmax.f32 %v341_v17, 0.0  ;;  %v375_v24 = vmax.f32 %v357_v18, 0.0 }
  0xe3   : > { %v352_v25 = vadd.f32 %v583_v19, %v533_v8  ;;  %v368_v26 = vadd.f32 %v587_v20, %v533_v8  ;;  %v343_v27 = vpop.f32.mrf.mxu0  ;;  %v359_v28 = vpop.f32.mrf.mxu1 }
  0xe4   : > { %414 = vst.msk [vmem:[%s722_s6 + $0x8] sm:$0xf] %vm411_vm1, %v558_v21  ;;  %418 = vst.msk [vmem:[%s722_s6 + $0x18] sm:$0xf] %vm411_vm1, %v562_v22  ;;  %v556_v29 = vpack.c.bf16 %v371_v23, %v371_v23  ;;  %v560_v30 = vpack.c.bf16 %v375_v24, %v375_v24  ;;  %v344_v31 = vadd.f32 %v533_v8, %v343_v27 }
  0xe5   : > { %v360_v32 = vadd.f32 %v533_v8, %v359_v28  ;;  %v374_v33 = vmax.f32 %v352_v25, 0.0  ;;  %v378_v34 = vmax.f32 %v368_v26, 0.0 }
  0xe6   : > { %412 = vst.msk [vmem:[%s722_s6] sm:$0xf] %vm411_vm1, %v556_v29  ;;  %416 = vst.msk [vmem:[%s722_s6 + $0x10] sm:$0xf] %vm411_vm1, %v560_v30  ;;  %v372_v35 = vmax.f32 %v344_v31, 0.0 }
  0xe7   : > { %v376_v36 = vmax.f32 %v360_v32, 0.0  ;;  %v559_v37 = vpack.c.bf16 %v374_v33, %v374_v33  ;;  %v563_v38 = vpack.c.bf16 %v378_v34, %v378_v34 }
  0xe8   : > { %v557_v39 = vpack.c.bf16 %v372_v35, %v372_v35 }
  0xe9   : > { %v561_v40 = vpack.c.bf16 %v376_v36, %v376_v36  ;;  %415 = vst.msk [vmem:[%s722_s6 + $0xc] sm:$0xf] %vm411_vm1, %v559_v37  ;;  %419 = vst.msk [vmem:[%s722_s6 + $0x1c] sm:$0xf] %vm411_vm1, %v563_v38 }
  0xea   : > { %413 = vst.msk [vmem:[%s722_s6 + $0x4] sm:$0xf] %vm411_vm1, %v557_v39 }
  0xeb   : > { %417 = vst.msk [vmem:[%s722_s6 + $0x14] sm:$0xf] %vm411_vm1, %v561_v40 }
  0xec PF: > { %s13_s14 = sadd.s32 1, %s650_s14   ;;  %s753_s12 = smov %s646_s13 }
  0xed   : > { %p10_p5 = scmp.ge.s32.totalorder %s13_s14, 4   ;;  %s754_s13 = smov %s756_s15 }
  0xef   :  { %12 = sbr.rel (!%p10_p5) target bundleno = 2 (0x2), region = 68 }

// kernel: fwd.11
= control target key start
LH: loop header
LB: loop body
LE: loop exit
PB: predicated region body
PF: predicated region fallthrough
CT: control target
= control target key end

     0   :  { %s744_s15 = smov 0   ;;  %s746_s16 = smov 0   ;;  %s809_s0 = inlined_call_operand.vmem [shape: bf16[128,16], index: 0, kind: input, shape index: {}]   ;;  %s810_s1 = inlined_call_operand.vmem [shape: bf16[16,64], index: 1, kind: input, shape index: {}]   ;;  %s811_s2 = inlined_call_operand.vmem [shape: f32[1,64], index: 2, kind: input, shape index: {}]   ;;  %s812_s3 = inlined_call_operand.vmem [shape: bf16[128,64], index: 3, kind: input, shape index: {}]   ;;  %s813_s4 = inlined_call_operand.vmem [shape: bf16[128,64], index: 4, kind: output, shape index: {}]  }
   0x1   :  { %s748_s17 = smov 0  }
   0x2 LB: > { %s26_s18 = sadd.s32 1, %s713_s16  ;;  %p595_p0 = scmp.ge.s32.totalorder %s717_s17, 1  ;;  %s717_s17 = sphi %s748_s17, %s14_s17   ;;  %s713_s16 = sphi %s746_s16, %s815_s16   ;;  %s709_s15 = sphi %s744_s15, %s814_s15  }
   0x3   : > { %p28_p1 = scmp.ge.s32.totalorder %s26_s18, 2  ;;  %p210_p2 = scmp.lt.s32.totalorder %s717_s17, 3 }
   0x5   : > { %s817_s18 = smov (%p28_p1, %s26_s18), 0  ;;  %p211_p3 = pnand %p595_p0, %p210_p2 }
   0x6   : > { %s596_s21 = sshll.u32 (!%p211_p3), %s709_s15, 3 }
   0x7   : > { %214 = sbr.rel (%p211_p3) target bundleno = 224 (0xe0), region = 36  ;;  %p255_p4 = scmp.lt.s32.totalorder (!%p211_p3), %s596_s21, 15 }
   0xc   : > { %v690_v0 = vld [vmem:[%s810_s1] sm:$0xff]   ;;  %s819_s21 = smov (!%p255_p4, %s596_s21), 15  ;;  %vm329_vm0 = vcmask 130048   ;;  %vm463_vm1 = vcmask 519168  }
   0xd   : > { %654 = vmatprep.subr.bf16.mxu0 %v690_v0  ;;  %664 = vmatprep.subr.bf16.mxu1 %v690_v0  ;;  %s765_s22 = sshll.u32 %s819_s21, 2  ;;  %v602_v7 = vld [vmem:[%s811_s2] ss:$0 sm:$0xff] }
   0xe   : > { %655 = vmatpush3.bf16.msra.mxu0 %v690_v0  ;;  %665 = vmatpush3.bf16.msra.mxu1 %v690_v0  ;;  %s258_s25 = scalar_lea.vmem %s809_s0, %s765_s22  ;;  %s274_s28 = scalar_lea.vmem %s812_s3, %s765_s22 }
   0xf   : > { %v691_v1 = vld [vmem:[%s258_s25] sm:$0xff]   ;;  %v692_v2 = vld [vmem:[%s258_s25 + $0x10] sm:$0xff]   ;;  %v693_v3 = vld [vmem:[%s258_s25 + $0x8] sm:$0xff]   ;;  %s782_s7 = scalar_lea.vmem %s813_s4, %s765_s22 }
  0x10   : > { %656 = vmatprep.mubr.msk.bf16.mxu0 %vm329_vm0, %v691_v1  ;;  %660 = vmatprep.mubr.msk.bf16.mxu1 %vm329_vm0, %v692_v2  ;;  %v694_v4 = vld [vmem:[%s258_s25 + $0x18] sm:$0xff]   ;;  %v646_v5 = vld [vmem:[%s274_s28 + $0x8] sm:$0xff]   ;;  %v631_v8 = vld [vmem:[%s274_s28] sm:$0xff]  }
  0x11   : > { %657 = vmatmul.mubr.msk.bf16.vlgmr.msra.gmra.mxu0 %vm329_vm0, %v693_v3  ;;  %661 = vmatmul.mubr.msk.bf16.vlgmr.msra.gmra.mxu1 %vm329_vm0, %v694_v4  ;;  %v648_v6 = vld [vmem:[%s274_s28 + $0x18] sm:$0xff]   ;;  %v636_v9 = vunpack.c.l.bf16 %v646_v5  ;;  %v647_v10 = vld [vmem:[%s274_s28 + $0x10] sm:$0xff]   ;;  %v632_v15 = vunpack.c.l.bf16 %v631_v8  ;;  %v637_v22 = vunpack.c.h.bf16 %v646_v5  ;;  %v633_v31 = vunpack.c.h.bf16 %v631_v8 }
  0x12   : > { %v644_v12 = vunpack.c.l.bf16 %v648_v6  ;;  %v640_v18 = vunpack.c.l.bf16 %v647_v10  ;;  %v645_v26 = vunpack.c.h.bf16 %v648_v6  ;;  %v641_v36 = vunpack.c.h.bf16 %v647_v10 }
  0xd1   : > { %v658_v11 = vpop.f32.mrf.mxu0  ;;  %v662_v14 = vpop.f32.mrf.mxu1 }
  0xd2   : > { %v385_v13 = vadd.f32 %v658_v11, %v602_v7  ;;  %v401_v16 = vadd.f32 %v662_v14, %v602_v7 }
  0xd3   : > { %v376_v17 = vpop.f32.mrf.mxu0  ;;  %v392_v21 = vpop.f32.mrf.mxu1 }
  0xd4   : > { %v425_v19 = vadd.f32 %v636_v9, %v385_v13  ;;  %v377_v20 = vadd.f32 %v602_v7, %v376_v17  ;;  %v429_v23 = vadd.f32 %v644_v12, %v401_v16  ;;  %v393_v24 = vadd.f32 %v602_v7, %v392_v21 }
  0xd5   : > { %v659_v25 = vpop.f32.mrf.mxu0  ;;  %v663_v30 = vpop.f32.mrf.mxu1 }
  0xd6   : > { %v624_v27 = vpack.c.bf16 %v425_v19, %v425_v19  ;;  %v423_v28 = vadd.f32 %v632_v15, %v377_v20  ;;  %v388_v29 = vadd.f32 %v659_v25, %v602_v7  ;;  %v628_v32 = vpack.c.bf16 %v429_v23, %v429_v23 }
  0xd7   : > { %v427_v33 = vadd.f32 %v640_v18, %v393_v24  ;;  %v404_v34 = vadd.f32 %v663_v30, %v602_v7  ;;  %v379_v35 = vpop.f32.mrf.mxu0  ;;  %v395_v40 = vpop.f32.mrf.mxu1 }
  0xd8   : > { %466 = vst.msk [vmem:[%s782_s7 + $0x8] sm:$0xf] %vm463_vm1, %v624_v27  ;;  %v622_v37 = vpack.c.bf16 %v423_v28, %v423_v28  ;;  %v426_v38 = vadd.f32 %v637_v22, %v388_v29  ;;  %v380_v39 = vadd.f32 %v602_v7, %v379_v35  ;;  %470 = vst.msk [vmem:[%s782_s7 + $0x18] sm:$0xf] %vm463_vm1, %v628_v32 }
  0xd9   : > { %v626_v41 = vpack.c.bf16 %v427_v33, %v427_v33  ;;  %v430_v42 = vadd.f32 %v645_v26, %v404_v34  ;;  %v396_v43 = vadd.f32 %v602_v7, %v395_v40 }
  0xda   : > { %464 = vst.msk [vmem:[%s782_s7] sm:$0xf] %vm463_vm1, %v622_v37  ;;  %v625_v44 = vpack.c.bf16 %v426_v38, %v426_v38  ;;  %v424_v45 = vadd.f32 %v633_v31, %v380_v39 }
  0xdb   : > { %468 = vst.msk [vmem:[%s782_s7 + $0x10] sm:$0xf] %vm463_vm1, %v626_v41  ;;  %v629_v46 = vpack.c.bf16 %v430_v42, %v430_v42  ;;  %v428_v47 = vadd.f32 %v641_v36, %v396_v43 }
  0xdc   : > { %467 = vst.msk [vmem:[%s782_s7 + $0xc] sm:$0xf] %vm463_vm1, %v625_v44  ;;  %v623_v48 = vpack.c.bf16 %v424_v45, %v424_v45 }
  0xdd   : > { %471 = vst.msk [vmem:[%s782_s7 + $0x1c] sm:$0xf] %vm463_vm1, %v629_v46  ;;  %v627_v49 = vpack.c.bf16 %v428_v47, %v428_v47 }
  0xde   : > { %465 = vst.msk [vmem:[%s782_s7 + $0x4] sm:$0xf] %vm463_vm1, %v623_v48 }
  0xdf   : > { %469 = vst.msk [vmem:[%s782_s7 + $0x14] sm:$0xf] %vm463_vm1, %v627_v49 }
  0xe0 PF: > { %s14_s17 = sadd.s32 1, %s717_s17   ;;  %s814_s15 = smov %s713_s16 }
  0xe1   : > { %p11_p5 = scmp.ge.s32.totalorder %s14_s17, 4   ;;  %s815_s16 = smov %s817_s18 }
  0xe3   :  { %13 = sbr.rel (!%p11_p5) target bundleno = 2 (0x2), region = 75 }

// kernel: fwd.10
= control target key start
LH: loop header
LB: loop body
LE: loop exit
PB: predicated region body
PF: predicated region fallthrough
CT: control target
= control target key end

     0   :  { %s1009_s12 = smov 0   ;;  %s1359_s0 = inlined_call_operand.vmem [shape: bf16[2,1,10,10,16], index: 0, kind: input, shape index: {}]   ;;  %s1360_s1 = inlined_call_operand.vmem [shape: bf16[144,16], index: 1, kind: input, shape index: {}]   ;;  %s1361_s2 = inlined_call_operand.vmem [shape: f32[1,16], index: 2, kind: input, shape index: {}]   ;;  %s1362_s3 = inlined_call_operand.vmem [shape: bf16[2,64,16], index: 3, kind: output, shape index: {}]  }
   0x1 LB: > { %s842_s13 = sadd.s32 4294967295, %s979_s12   ;;  %p846_p0 = scmp.ge.s32.totalorder %s979_s12, 1  ;;  %s979_s12 = sphi %s1009_s12, %s13_s12  }
   0x2   : > { %p137_p1 = scmp.lt.s32.totalorder %s979_s12, 3 }
   0x4   : > { %p138_p2 = pnand %p846_p0, %p137_p1 }
   0x5   : > { %p161_p3 = scmp.lt.s32.totalorder (!%p138_p2), %s842_s13, 1  ;;  %s982_s26 = smov (!%p138_p2), 48  }
   0x6   : > { %141 = sbr.rel (%p138_p2) target bundleno = 402 (0x192), region = 32  ;;  %s983_s27 = smov (!%p138_p2), 32  }
   0x7   : > { %s984_s30 = smov (!%p138_p2), 80   ;;  %s985_s8 = smov (!%p138_p2), 16  }
   0x8   : > { %s986_s15 = smov (!%p138_p2), 64   ;;  %s988_s17 = smov (!%p138_p2), 112  }
   0xb   : > { %vm323_vm0 = vcmask 1042432   ;;  %vm324_vm1 = vcmask 1046532   ;;  %v963_v0 = vld [vmem:[%s1360_s1 + $0x38] sm:$0xff]   ;;  %s1368_s13 = smov (!%p161_p3, %s842_s13), 1  ;;  %v981_v1 = vmov 0   ;;  %v964_v3 = vld [vmem:[%s1360_s1 + $0x30] sm:$0xff]  }
   0xc   : > { %920 = vmatprep.subr.bf16.mxu1 %v981_v1  ;;  %673 = vmatprep.subr.bf16.mxu0 %v981_v1  ;;  %s938_s16 = smul.u32 80, %s1368_s13  ;;  %vm1025_vm2 = vmor %vm323_vm0, %vm324_vm1  ;;  %v965_v4 = vld [vmem:[%s1360_s1 + $0x28] sm:$0xff]   ;;  %vm192_vm3 = vsmask.f32 3328  ;;  %vm193_vm4 = vsmask.f32 7440 }
   0xd   : > { %929 = vmatpush1.bf16.msra.mxu1 %v963_v0  ;;  %674 = vmatpush1.bf16.msra.mxu0 %v963_v0  ;;  %v966_v17 = vld [vmem:[%s1360_s1 + $0x20] sm:$0xff]   ;;  %v967_v45 = vld [vmem:[%s1360_s1 + $0x18] sm:$0xff]   ;;  %vm1135_vm5 = vmor %vm192_vm3, %vm193_vm4  ;;  %vm511_vm6 = vcmask 130048   ;;  %vm524_vm7 = vcmask 261120   ;;  %vm533_vm8 = vcmask 392192   ;;  %vm542_vm9 = vcmask 523264  }
   0xe   : > { %921 = vmatprep.subr.bf16.mxu1 %v981_v1  ;;  %675 = vmatprep.subr.bf16.mxu0 %v981_v1  ;;  %s1040_s23 = scalar_lea.vmem %s1359_s0, %s938_s16  ;;  %v969_v62 = vld [vmem:[%s1360_s1 + $0x10] sm:$0xff]   ;;  %s987_s16 = smov 96   ;;  %vm551_vm10 = vcmask 654336   ;;  %vm560_vm11 = vcmask 785408   ;;  %vm569_vm12 = vcmask 916480   ;;  %vm778_vm13 = vcmask 125952  }
   0xf   : > { %v1043_v5 = vld [vmem:[%s1040_s23 + $0x28] sm:$0xf]  ;;  %v1046_v6 = vld [vmem:[%s1040_s23 + $0x30] sm:$0xf]  ;;  %v1057_v10 = vld [vmem:[%s1040_s23] sm:$0xf] }
  0x10   : > { %v1049_v7 = vld [vmem:[%s1040_s23 + $0x8] sm:$0xf]  ;;  %v874_v8 = vcombine.low %v1043_v5, %v1046_v6  ;;  %v1054_v9 = vld [vmem:[%s1040_s23 + $0x10] sm:$0xf]  ;;  %v173_v11 = vld [vmem:[%s1040_s23 + $0x4] sm:$0x1] }
  0x11   : > { %930 = vmatpush1.bf16.msra.mxu1 %v964_v3  ;;  %676 = vmatpush1.bf16.msra.mxu0 %v964_v3  ;;  %v872_v12 = vcombine.low %v1049_v7, %v1054_v9  ;;  %v1065_v13 = vld [vmem:[%s1040_s23 + $0xc] sm:$0x1]  ;;  %v850_v14 = vrot.slane %v1057_v10, 9  ;;  %v328_v15 = vrot.slane %v173_v11, 5  ;;  %v851_v16 = vrot.slane %v1049_v7, 9  ;;  %s911_s20 = sshll.u32 %s1368_s13, 5 }
  0x12   : > { %922 = vmatprep.subr.bf16.mxu1 %v981_v1  ;;  %677 = vmatprep.subr.bf16.mxu0 %v981_v1  ;;  %v332_v18 = vrot.slane %v1065_v13, 5  ;;  %v1075_v19 = vld [vmem:[%s1040_s23 + $0x14] sm:$0x1]  ;;  %v852_v20 = vrot.slane %v1054_v9, 9  ;;  %v1079_v21 = vld [vmem:[%s1040_s23 + $0x20] sm:$0xf]  ;;  %v860_v22 = vcombine.low %v1057_v10, %v1049_v7 }
  0x13   : > { %459 = vrot.lane.b32.xlu1 %v874_v8, %s982_s26  ;;  %455 = vrot.lane.b32.xlu0 %v872_v12, %s982_s26  ;;  %v329_v23 = vsel %vm1025_vm2, %v850_v14, %v328_v15  ;;  %v336_v24 = vrot.slane %v1075_v19, 5  ;;  %v1088_v25 = vld [vmem:[%s1040_s23 + $0x24] sm:$0x1]  ;;  %v1091_v26 = vld [vmem:[%s1040_s23 + $0x2c] sm:$0x1]  ;;  %v854_v27 = vrot.slane %v1079_v21, 9 }
  0x14   : > { %v333_v28 = vsel %vm1025_vm2, %v851_v16, %v332_v18  ;;  %v344_v29 = vrot.slane %v1088_v25, 5  ;;  %v855_v30 = vrot.slane %v1043_v5, 9  ;;  %v348_v31 = vrot.slane %v1091_v26, 5  ;;  %v1115_v40 = vld [vmem:[%s1040_s23 + $0x34] sm:$0x1] }
  0x15   : > { %931 = vmatpush1.bf16.msra.mxu1 %v965_v4  ;;  %678 = vmatpush1.bf16.msra.mxu0 %v965_v4  ;;  %v868_v32 = vcombine.low %v329_v23, %v333_v28  ;;  %v1102_v33 = vsel %vm1025_vm2, %v852_v20, %v336_v24  ;;  %v196_v34 = vshrl.u32 %v1057_v10, 16  ;;  %v199_v35 = vshll.u32 %v1057_v10, 16  ;;  %v1161_v18 = vld [vmem:[%s1040_s23 + $0x38] sm:$0xf]  ;;  %v970_v20 = vld [vmem:[%s1360_s1 + $0x8] sm:$0xff]  }
  0x16   : > { %923 = vmatprep.subr.bf16.mxu1 %v981_v1  ;;  %679 = vmatprep.subr.bf16.mxu0 %v981_v1  ;;  %v880_v36 = vcombine.low %v333_v28, %v1102_v33  ;;  %v1110_v37 = vsel %vm1025_vm2, %v854_v27, %v344_v29  ;;  %v349_v38 = vsel %vm1025_vm2, %v855_v30, %v348_v31  ;;  %v205_v39 = vshll.u32 %v173_v11, 16 }
  0x17   : > { %442 = vrot.lane.b32.xlu1 %v868_v32, %s983_s27  ;;  %v1119_v41 = vcombine.low %v1110_v37, %v349_v38  ;;  %v198_v42 = vrot.slane %v196_v34, 4  ;;  %v201_v43 = vrot.slane %v199_v35, 5  ;;  %v210_v44 = vshrl.u32 %v1049_v7, 16 }
  0x18   : > { %481 = vrot.lane.b32.xlu0 %v880_v36, %s984_s30  ;;  %v207_v46 = vrot.slane %v205_v39, 5  ;;  %v213_v47 = vshll.u32 %v1049_v7, 16  ;;  %v219_v48 = vshll.u32 %v1065_v13, 16  ;;  %v856_v49 = vrot.slane %v1046_v6, 9  ;;  %v1176_v36 = vld [vmem:[%s1040_s23 + $0x18] sm:$0xf] }
  0x19   : > { %932 = vmatpush1.bf16.msra.mxu1 %v966_v17  ;;  %680 = vmatpush1.bf16.msra.mxu0 %v966_v17  ;;  %v202_v50 = vor.u32 %v201_v43, %v198_v42  ;;  %v212_v51 = vrot.slane %v210_v44, 4  ;;  %v352_v52 = vrot.slane %v1115_v40, 5  ;;  %v252_v53 = vshrl.u32 %v1079_v21, 16  ;;  %v187_v43 = vld [vmem:[%s1040_s23 + $0x3c] sm:$0x1] }
  0x1a   : > { %924 = vmatprep.subr.bf16.mxu1 %v981_v1  ;;  %681 = vmatprep.subr.bf16.mxu0 %v981_v1  ;;  %v215_v55 = vrot.slane %v213_v47, 5  ;;  %v255_v56 = vshll.u32 %v1079_v21, 16  ;;  %v261_v57 = vshll.u32 %v1088_v25, 16  ;;  %v266_v61 = vshrl.u32 %v1043_v5, 16  ;;  %v971_v47 = vld [vmem:[%s1360_s1] sm:$0xff]  }
  0x1b   : > { %446 = vrot.lane.b32.xlu1 %v1119_v41, %s983_s27  ;;  %v203_v58 = vrot.slane %v202_v50, 4  ;;  %v1145_v59 = vsel %vm1025_vm2, %v856_v49, %v352_v52  ;;  %v254_v60 = vrot.slane %v252_v53, 4  ;;  %v221_v0 = vrot.slane %v219_v48, 5 }
  0x1c   : > { %v216_v63 = vor.u32 %v215_v55, %v212_v51  ;;  %v882_v3 = vcombine.low %v349_v38, %v1145_v59  ;;  %v257_v4 = vrot.slane %v255_v56, 5  ;;  %v268_v11 = vrot.slane %v266_v61, 4  ;;  %v179_v55 = vld [vmem:[%s1040_s23 + $0x1c] sm:$0x1] }
  0x1d   : > { %933 = vmatpush1.bf16.msra.mxu1 %v967_v45  ;;  %682 = vmatpush1.bf16.msra.mxu0 %v967_v45  ;;  %v208_v8 = vsel %vm1135_vm5, %v203_v58, %v207_v46  ;;  %v269_v12 = vshll.u32 %v1043_v5, 16  ;;  %v275_v13 = vshll.u32 %v1091_v26, 16  ;;  %v280_v16 = vshrl.u32 %v1046_v6, 16 }
  0x1e   : > { %925 = vmatprep.subr.bf16.mxu1 %v981_v1  ;;  %683 = vmatprep.subr.bf16.mxu0 %v981_v1  ;;  %v217_v14 = vrot.slane %v216_v63, 4  ;;  %v258_v15 = vor.u32 %v257_v4, %v254_v60  ;;  %v283_v17 = vshll.u32 %v1046_v6, 16  ;;  %v263_v23 = vrot.slane %v261_v57, 5  ;;  %v972_v4 = vld [vmem:[%s1360_s1 + $0x40] sm:$0xff]  }
  0x1f   : > { %485 = vrot.lane.b32.xlu1 %v882_v3, %s984_s30  ;;  %v271_v24 = vrot.slane %v269_v12, 5  ;;  %v289_v25 = vshll.u32 %v1115_v40, 16  ;;  %v224_v26 = vshrl.u32 %v1054_v9, 16  ;;  %v282_v29 = vrot.slane %v280_v16, 4 }
  0x20   : > { %v1171_v27 = vsel %vm1135_vm5, %v217_v14, %v221_v0  ;;  %v259_v28 = vrot.slane %v258_v15, 4  ;;  %v285_v30 = vrot.slane %v283_v17, 5  ;;  %v277_v34 = vrot.slane %v275_v13, 5 }
  0x21   : > { %934 = vmatpush1.bf16.msra.mxu1 %v969_v62  ;;  %684 = vmatpush1.bf16.msra.mxu0 %v969_v62  ;;  %v864_v31 = vcombine.low %v208_v8, %v1171_v27  ;;  %v272_v32 = vor.u32 %v271_v24, %v268_v11  ;;  %v291_v35 = vrot.slane %v289_v25, 5  ;;  %v226_v39 = vrot.slane %v224_v26, 4  ;;  %v1220_v25 = vld [vmem:[%s1040_s23 + $0x40] sm:$0xf] }
  0x22   : > { %926 = vmatprep.subr.bf16.mxu1 %v981_v1  ;;  %685 = vmatprep.subr.bf16.mxu0 %v981_v1  ;;  %v286_v38 = vor.u32 %v285_v30, %v282_v29  ;;  %v227_v40 = vshll.u32 %v1054_v9, 16  ;;  %v233_v42 = vshll.u32 %v1075_v19, 16  ;;  %v1185_v44 = vsel %vm1135_vm5, %v259_v28, %v263_v23 }
  0x23   : > { %422 = vrot.lane.b32.xlu0 %v864_v31, %s985_s8  ;;  %v273_v45 = vrot.slane %v272_v32, 4  ;;  %v294_v46 = vshrl.u32 %v1161_v18, 16  ;;  %v297_v50 = vshll.u32 %v1161_v18, 16  ;;  %v303_v53 = vshll.u32 %v187_v43, 16  ;;  %v189_v32 = vld [vmem:[%s1040_s23 + $0x44] sm:$0x1] }
  0x24   : > { %v287_v48 = vrot.slane %v286_v38, 4  ;;  %v229_v49 = vrot.slane %v227_v40, 5  ;;  %v235_v19 = vrot.slane %v233_v42, 5  ;;  %v238_v56 = vshrl.u32 %v1176_v36, 16 }
  0x25   : > { %935 = vmatpush1.bf16.msra.mxu1 %v970_v20  ;;  %686 = vmatpush1.bf16.msra.mxu0 %v970_v20  ;;  %v278_v51 = vsel %vm1135_vm5, %v273_v45, %v277_v34  ;;  %v296_v52 = vrot.slane %v294_v46, 4  ;;  %v299_v61 = vrot.slane %v297_v50, 5  ;;  %v305_v63 = vrot.slane %v303_v53, 5 }
  0x26   : > { %927 = vmatprep.subr.bf16.mxu1 %v981_v1  ;;  %687 = vmatprep.subr.bf16.mxu0 %v981_v1  ;;  %v1199_v57 = vcombine.low %v1185_v44, %v278_v51  ;;  %v292_v58 = vsel %vm1135_vm5, %v287_v48, %v291_v35  ;;  %v230_v60 = vor.u32 %v229_v49, %v226_v39  ;;  %v240_v0 = vrot.slane %v238_v56, 4  ;;  %v190_v35 = vld [vmem:[%s1040_s23 + $0x48] sm:$0xf]  ;;  %v191_v39 = vld [vmem:[%s1040_s23 + $0x4c] sm:$0x1]  ;;  %s1338_s23 = scalar_lea.vmem %s1362_s3, %s911_s20 }
  0x27   : > { %v878_v62 = vcombine.low %v278_v51, %v292_v58  ;;  %v241_v3 = vshll.u32 %v1176_v36, 16  ;;  %v300_v11 = vor.u32 %v299_v61, %v296_v52  ;;  %v247_v12 = vshll.u32 %v179_v55, 16 }
  0x28   : > { %426 = vrot.lane.b32.xlu0 %v1199_v57, %s985_s8  ;;  %v231_v8 = vrot.slane %v230_v60, 4  ;;  %v857_v13 = vrot.slane %v1161_v18, 9  ;;  %v1213_v14 = vcombine.low %v1046_v6, %v1161_v18  ;;  %v356_v16 = vrot.slane %v187_v43, 5 }
  0x29   : > { %936 = vmatpush1.bf16.msra.mxu1 %v971_v47  ;;  %688 = vmatpush1.bf16.msra.mxu0 %v971_v47  ;;  %v243_v15 = vrot.slane %v241_v3, 5  ;;  %v301_v20 = vrot.slane %v300_v11, 4  ;;  %v853_v23 = vrot.slane %v1176_v36, 9  ;;  %v340_v24 = vrot.slane %v179_v55, 5 }
  0x2a   : > { %472 = vrot.lane.b32.xlu1 %v878_v62, %s986_s15  ;;  %928 = vmatprep.subr.bf16.mxu1 %v981_v1  ;;  %v236_v17 = vsel %vm1135_vm5, %v231_v8, %v235_v19  ;;  %v249_v28 = vrot.slane %v247_v12, 5  ;;  %v1226_v29 = vcombine.low %v1054_v9, %v1176_v36  ;;  %v357_v31 = vsel %vm1025_vm2, %v857_v13, %v356_v16 }
  0x2b   : > { %703 = vmatprep.subr.bf16.mxu0 %v981_v1  ;;  %v876_v26 = vcombine.low %v1171_v27, %v236_v17  ;;  %v244_v6 = vor.u32 %v243_v15, %v240_v0  ;;  %v306_v30 = vsel %vm1135_vm5, %v301_v20, %v305_v63  ;;  %v359_v34 = vshrl.u32 %v1220_v25, 16 }
  0x2c   : > { %v867_v1 = vcombine.low %v292_v58, %v306_v30  ;;  %v362_v9 = vshll.u32 %v1220_v25, 16  ;;  %v341_v38 = vsel %vm1025_vm2, %v853_v23, %v340_v24  ;;  %v858_v40 = vrot.slane %v1220_v25, 9 }
  0x2d   : > { %937 = vmatpush2.bf16.msra.mxu1 %v972_v4  ;;  %704 = vmatpush2.bf16.msra.mxu0 %v972_v4  ;;  %v245_v27 = vrot.slane %v244_v6, 4  ;;  %v376_v42 = vrot.slane %v189_v32, 5  ;;  %v859_v43 = vrot.slane %v190_v35, 9  ;;  %v361_v46 = vrot.slane %v359_v34, 4 }
  0x2e   : > { %468 = vrot.lane.b32.xlu0 %v876_v26, %s986_s15  ;;  %495 = vrot.lane.b32.xlu1 %v1213_v14, %s987_s16  ;;  %v364_v47 = vrot.slane %v362_v9, 5  ;;  %v396_v48 = vrot.slane %v191_v39, 5  ;;  %v871_v49 = vcombine.low %v1145_v59, %v357_v31  ;;  %v869_v52 = vcombine.low %v1102_v33, %v341_v38 }
  0x2f   : > { %v250_v45 = vsel %vm1135_vm5, %v245_v27, %v249_v28  ;;  %v1251_v50 = vsel %vm1025_vm2, %v858_v40, %v376_v42  ;;  %v368_v55 = vshll.u32 %v189_v32, 16  ;;  %v379_v58 = vshrl.u32 %v190_v35, 16 }
  0x30   : > { %v865_v19 = vcombine.low %v236_v17, %v250_v45  ;;  %v1255_v51 = vsel %vm1025_vm2, %v859_v43, %v396_v48  ;;  %v365_v53 = vor.u32 %v364_v47, %v361_v46  ;;  %899 = vmatprep.mubr.msk.bf16.mxu1 %vm511_vm6, %v871_v49  ;;  %897 = vmatprep.mubr.msk.bf16.mxu0 %vm511_vm6, %v869_v52  ;;  %v382_v60 = vshll.u32 %v190_v35, 16 }
  0x31   : > { %v886_v59 = vcombine.low %v1251_v50, %v1255_v51  ;;  %v370_v2 = vrot.slane %v368_v55, 5  ;;  %v875_v33 = vcombine.low %v1161_v18, %v1220_v25  ;;  %v381_v62 = vrot.slane %v379_v58, 4 }
  0x32   : > { %491 = vrot.lane.b32.xlu0 %v1226_v29, %s987_s16  ;;  %505 = vrot.lane.b32.xlu1 %v867_v1, %s988_s17  ;;  %v366_v56 = vrot.slane %v365_v53, 4  ;;  %v384_v63 = vrot.slane %v382_v60, 5  ;;  %v873_v0 = vcombine.low %v1176_v36, %v1079_v21  ;;  %v388_v8 = vshll.u32 %v191_v39, 16 }
  0x33   : > { %v877_v18 = vcombine.low %v250_v45, %v1185_v44  ;;  %v883_v11 = vcombine.low %v357_v31, %v1251_v50  ;;  %v881_v15 = vcombine.low %v341_v38, %v1110_v37  ;;  %v884_v36 = vcombine.low %v1220_v25, %v190_v35 }
  0x34   : > { %v371_v61 = vsel %vm1135_vm5, %v366_v56, %v370_v2  ;;  %v385_v4 = vor.u32 %v384_v63, %v381_v62  ;;  %v390_v13 = vrot.slane %v388_v8, 5  ;;  %v862_v44 = vcombine.low %v1079_v21, %v1043_v5 }
  0x35   : > { %v879_v3 = vcombine.low %v306_v30, %v371_v61 }
  0x36   : > { %501 = vrot.lane.b32.xlu0 %v865_v19, %s988_s17  ;;  %428 = vrot.lane.b32.xlu1 %v867_v1, %s985_s8  ;;  %v386_v12 = vrot.slane %v385_v4, 4 }
  0x38   : > { %v391_v16 = vsel %vm1135_vm5, %v386_v12, %v390_v13 }
  0x39   : > { %v885_v17 = vcombine.low %v371_v61, %v391_v16 }
  0x3a   : > { %424 = vrot.lane.b32.xlu0 %v865_v19, %s985_s8  ;;  %448 = vrot.lane.b32.xlu1 %v871_v49, %s983_s27 }
  0x3e   : > { %444 = vrot.lane.b32.xlu0 %v869_v52, %s983_s27  ;;  %461 = vrot.lane.b32.xlu1 %v875_v33, %s982_s26 }
  0x42   : > { %457 = vrot.lane.b32.xlu0 %v873_v0, %s982_s26  ;;  %474 = vrot.lane.b32.xlu1 %v879_v3, %s986_s15 }
  0x46   : > { %470 = vrot.lane.b32.xlu0 %v877_v18, %s986_s15  ;;  %487 = vrot.lane.b32.xlu1 %v883_v11, %s984_s30  ;;  %v887_v11 = vld [vmem:[%s1361_s2] ss:$0 sm:$0xff] }
  0x4a   : > { %483 = vrot.lane.b32.xlu0 %v881_v15, %s984_s30  ;;  %497 = vrot.lane.b32.xlu1 %v884_v36, %s987_s16 }
  0x4e   : > { %493 = vrot.lane.b32.xlu0 %v862_v44, %s987_s16  ;;  %507 = vrot.lane.b32.xlu1 %v885_v17, %s988_s17 }
  0x52   : > { %503 = vrot.lane.b32.xlu0 %v1199_v57, %s988_s17 }
  0x85   : > { %v460_v37 = vpop.permute.xlu1 %459  ;;  %v456_v20 = vpop.permute.xlu0 %455 }
  0x89   : > { %v443_v23 = vpop.permute.xlu1 %442 }
  0x8a   : > { %v482_v54 = vpop.permute.xlu0 %481 }
  0x8d   : > { %v447_v24 = vpop.permute.xlu1 %446 }
  0x91   : > { %v486_v26 = vpop.permute.xlu1 %485 }
  0x95   : > { %v423_v25 = vpop.permute.xlu0 %422 }
  0x96   : > { %v514_v21 = vsel %vm511_vm6, %v860_v22, %v423_v25 }
  0x97   : > { %v526_v31 = vsel %vm524_vm7, %v514_v21, %v443_v23 }
  0x98   : > { %v535_v34 = vsel %vm533_vm8, %v526_v31, %v456_v20 }
  0x9a   : > { %v427_v6 = vpop.permute.xlu0 %426 }
  0x9b   : > { %v520_v28 = vsel %vm511_vm6, %v862_v44, %v427_v6 }
  0x9c   : > { %v473_v5 = vpop.permute.xlu1 %472  ;;  %v530_v30 = vsel %vm524_vm7, %v520_v28, %v447_v24 }
  0x9d   : > { %v539_v57 = vsel %vm533_vm8, %v530_v30, %v460_v37 }
  0x9e   : > { %v548_v32 = vsel %vm542_vm9, %v539_v57, %v473_v5 }
  0x9f   : > { %v557_v7 = vsel %vm551_vm10, %v548_v32, %v486_v26 }
  0xa0   : > { %v469_v1 = vpop.permute.xlu0 %468  ;;  %v496_v27 = vpop.permute.xlu1 %495 }
  0xa1   : > { %v544_v10 = vsel %vm542_vm9, %v535_v34, %v469_v1  ;;  %v566_v22 = vsel %vm560_vm11, %v557_v7, %v496_v27 }
  0xa2   : > { %v553_v39 = vsel %vm551_vm10, %v544_v10, %v482_v54 }
  0xa4   : > { %v492_v9 = vpop.permute.xlu0 %491  ;;  %v506_v35 = vpop.permute.xlu1 %505 }
  0xa5   : > { %v577_v38 = vsel %vm569_vm12, %v566_v22, %v506_v35  ;;  %v562_v40 = vsel %vm560_vm11, %v553_v39, %v492_v9 }
  0xa6   : > { %722 = vmatmul.mubr.bf16.vlgmr.msra.gmra.mxu1 %v577_v38 }
  0xa7   : > { %900 = vmatprep.mubr.msk.bf16.mxu1 %vm511_vm6, %v886_v59 }
  0xa8   : > { %v502_v42 = vpop.permute.xlu0 %501  ;;  %v429_v43 = vpop.permute.xlu1 %428 }
  0xa9   : > { %v571_v45 = vsel %vm569_vm12, %v562_v40, %v502_v42  ;;  %v523_v51 = vsel %vm511_vm6, %v1213_v14, %v429_v43 }
  0xaa   : > { %706 = vmatmul.mubr.bf16.vlgmr.msra.gmra.mxu0 %v571_v45 }
  0xab   : > { %898 = vmatprep.mubr.msk.bf16.mxu0 %vm511_vm6, %v1119_v41 }
  0xac   : > { %v425_v46 = vpop.permute.xlu0 %424  ;;  %v449_v47 = vpop.permute.xlu1 %448 }
  0xad   : > { %v532_v55 = vsel %vm524_vm7, %v523_v51, %v449_v47  ;;  %v517_v41 = vsel %vm511_vm6, %v1226_v29, %v425_v46 }
  0xb0   : > { %v445_v48 = vpop.permute.xlu0 %444  ;;  %v462_v49 = vpop.permute.xlu1 %461 }
  0xb1   : > { %v541_v2 = vsel %vm533_vm8, %v532_v55, %v462_v49  ;;  %v528_v33 = vsel %vm524_vm7, %v517_v41, %v445_v48 }
  0xb4   : > { %v458_v19 = vpop.permute.xlu0 %457  ;;  %v475_v52 = vpop.permute.xlu1 %474 }
  0xb5   : > { %v550_v58 = vsel %vm542_vm9, %v541_v2, %v475_v52  ;;  %v537_v63 = vsel %vm533_vm8, %v528_v33, %v458_v19 }
  0xb8   : > { %v471_v53 = vpop.permute.xlu0 %470  ;;  %v488_v50 = vpop.permute.xlu1 %487 }
  0xb9   : > { %v559_v60 = vsel %vm551_vm10, %v550_v58, %v488_v50  ;;  %v546_v3 = vsel %vm542_vm9, %v537_v63, %v471_v53 }
  0xbc   : > { %v484_v59 = vpop.permute.xlu0 %483  ;;  %v498_v56 = vpop.permute.xlu1 %497 }
  0xbd   : > { %v568_v61 = vsel %vm560_vm11, %v559_v60, %v498_v56  ;;  %v555_v4 = vsel %vm551_vm10, %v546_v3, %v484_v59 }
  0xc0   : > { %v494_v62 = vpop.permute.xlu0 %493  ;;  %v508_v14 = vpop.permute.xlu1 %507 }
  0xc1   : > { %v580_v0 = vsel %vm569_vm12, %v568_v61, %v508_v14  ;;  %v564_v29 = vsel %vm560_vm11, %v555_v4, %v494_v62 }
  0xc2   : > { %730 = vmatmul.mubr.bf16.gmra.mxu1 %v580_v0 }
  0xc4   : > { %v504_v8 = vpop.permute.xlu0 %503 }
  0xc5   : > { %v574_v18 = vsel %vm569_vm12, %v564_v29, %v504_v8 }
  0xc6   : > { %714 = vmatmul.mubr.bf16.gmra.mxu0 %v574_v18 }
 0x166   : > { %v723_v12 = vpop.f32.mrf.mxu1 }
 0x167   : > { %v724_v13 = vadd.f32 %v887_v11, %v723_v12 }
 0x168   : > { %v725_v15 = vpop.f32.mrf.mxu1 }
 0x169   : > { %v742_v36 = vmax.f32 %v724_v13, 0.0 }
 0x16a   : > { %v707_v16 = vpop.f32.mrf.mxu0  ;;  %v726_v44 = vpop.f32.mrf.mxu1 }
 0x16b   : > { %v916_v17 = vpack.c.bf16 %v742_v36, %v742_v36  ;;  %v708_v37 = vadd.f32 %v887_v11, %v707_v16  ;;  %v727_v20 = vadd.f32 %v887_v11, %v726_v44 }
 0x16c   : > { %v709_v23 = vpop.f32.mrf.mxu0  ;;  %v728_v54 = vpop.f32.mrf.mxu1 }
 0x16d   : > { %783 = vst.msk [vmem:[%s1338_s23 + $0x10] sm:$0xf] %vm778_vm13, %v916_v17  ;;  %v738_v24 = vmax.f32 %v708_v37, 0.0  ;;  %v743_v25 = vmax.f32 %v727_v20, 0.0 }
 0x16e   : > { %v710_v26 = vpop.f32.mrf.mxu0 }
 0x16f   : > { %v912_v6 = vpack.c.bf16 %v738_v24, %v738_v24  ;;  %v917_v28 = vpack.c.bf16 %v743_v25, %v743_v25  ;;  %v711_v5 = vadd.f32 %v887_v11, %v710_v26 }
 0x170   : > { %v712_v21 = vpop.f32.mrf.mxu0 }
 0x171   : > { %779 = vst.msk [vmem:[%s1338_s23] sm:$0xf] %vm778_vm13, %v912_v6  ;;  %784 = vst.msk [vmem:[%s1338_s23 + $0x14] sm:$0xf] %vm778_vm13, %v917_v28  ;;  %v739_v30 = vmax.f32 %v711_v5, 0.0 }
 0x173   : > { %v913_v57 = vpack.c.bf16 %v739_v30, %v739_v30 }
 0x175   : > { %780 = vst.msk [vmem:[%s1338_s23 + $0x4] sm:$0xf] %vm778_vm13, %v913_v57 }
 0x182   : > { %v731_v31 = vpop.f32.mrf.mxu1 }
 0x183   : > { %v732_v32 = vadd.f32 %v887_v11, %v731_v31 }
 0x184   : > { %v733_v1 = vpop.f32.mrf.mxu1 }
 0x185   : > { %v744_v27 = vmax.f32 %v732_v32, 0.0 }
 0x186   : > { %v715_v34 = vpop.f32.mrf.mxu0  ;;  %v734_v7 = vpop.f32.mrf.mxu1 }
 0x187   : > { %v918_v10 = vpack.c.bf16 %v744_v27, %v744_v27  ;;  %v716_v22 = vadd.f32 %v887_v11, %v715_v34  ;;  %v735_v9 = vadd.f32 %v887_v11, %v734_v7 }
 0x188   : > { %v717_v35 = vpop.f32.mrf.mxu0  ;;  %v736_v38 = vpop.f32.mrf.mxu1 }
 0x189   : > { %785 = vst.msk [vmem:[%s1338_s23 + $0x18] sm:$0xf] %vm778_vm13, %v918_v10  ;;  %v740_v39 = vmax.f32 %v716_v22, 0.0  ;;  %v745_v40 = vmax.f32 %v735_v9, 0.0 }
 0x18a   : > { %v718_v42 = vpop.f32.mrf.mxu0 }
 0x18b   : > { %v914_v43 = vpack.c.bf16 %v740_v39, %v740_v39  ;;  %v919_v45 = vpack.c.bf16 %v745_v40, %v745_v40  ;;  %v719_v46 = vadd.f32 %v887_v11, %v718_v42 }
 0x18c   : > { %v720_v47 = vpop.f32.mrf.mxu0 }
 0x18d   : > { %781 = vst.msk [vmem:[%s1338_s23 + $0x8] sm:$0xf] %vm778_vm13, %v914_v43  ;;  %786 = vst.msk [vmem:[%s1338_s23 + $0x1c] sm:$0xf] %vm778_vm13, %v919_v45  ;;  %v741_v48 = vmax.f32 %v719_v46, 0.0 }
 0x18f   : > { %v915_v49 = vpack.c.bf16 %v741_v48, %v741_v48 }
 0x191   : > { %782 = vst.msk [vmem:[%s1338_s23 + $0xc] sm:$0xf] %vm778_vm13, %v915_v49 }
 0x192 PF: > { %s13_s12 = sadd.s32 1, %s979_s12  }
 0x193   : > { %p10_p4 = scmp.ge.s32.totalorder %s13_s12, 4  }
 0x195   :  { %12 = sbr.rel (!%p10_p4) target bundleno = 1 (0x1), region = 62 }

</bundles_post_ra>
